<compile_context>
chip_gen: v5e
topology: v5e:2x2
jax: 0.10.0
libtpu: 0.0.40
codegen_flags: <defaults>
</compile_context>

<pallas_src>
import math
import functools

import jax
import jax.numpy as jnp
from jax.experimental import pallas as pl
from jax.experimental.pallas import tpu as pltpu  # noqa: F401  (TPU backend import)


def _attention_kernel(q_ref, k_ref, v_ref, o_ref, *, scale):
    # q_ref, k_ref, v_ref: (B, H, S, D) in VMEM;  o_ref: (B, H, D, S) in VMEM.
    B, H, S, D = q_ref.shape
    G = B * H

    # Fold the 1/sqrt(n_heads) scale into q (S*D elements, vs. D*D for the score).
    q = (q_ref[...] * scale).reshape(G, S, D)   # leading-dim merge: layout no-op
    k = k_ref[...].reshape(G, S, D)
    v = v_ref[...].reshape(G, S, D)

    # score[g, d, e] = sum_s q[g, s, d] * k[g, s, e]      (q^T @ k, contract over S)
    score = jnp.einsum("gsd,gse->gde", q, k, preferred_element_type=jnp.float32)

    # Numerically stable softmax over the last axis (exact reciprocal for 1e-5 tol).
    m = jnp.max(score, axis=-1, keepdims=True)
    e = jnp.exp(score - m)
    p = e * pl.reciprocal(jnp.sum(e, axis=-1, keepdims=True), approx=False)

    # out[g, d, s] = sum_e p[g, d, e] * v[g, s, e]        (score @ v^T)
    out = jnp.einsum("gde,gse->gds", p, v, preferred_element_type=jnp.float32)

    o_ref[...] = out.reshape(B, H, D, S).astype(o_ref.dtype)


def attention(q, k, v):
    """q, k, v: (B, H, S, D) float32.  Returns (B, H, D, S) float32 (module layout)."""
    B, H, S, D = q.shape
    assert k.shape == (B, H, S, D) and v.shape == (B, H, S, D)
    scale = 1.0 / math.sqrt(H)  # PyTorch divides by sqrt(q.size(1)) == sqrt(n_heads)

    kernel = functools.partial(_attention_kernel, scale=scale)

    # Advisory cost hint: two (S x D x D) matmuls per head, exp over the (D, D) scores,
    # 3 inputs + 1 output of B*H*S*D f32 each.
    flops = 4 * B * H * S * D * D
    transcendentals = B * H * D * D
    bytes_accessed = 4 * (B * H * S * D) * 4

    return pl.pallas_call(
        kernel,
        out_shape=jax.ShapeDtypeStruct((B, H, D, S), jnp.float32),
        cost_estimate=pl.CostEstimate(
            flops=flops,
            transcendentals=transcendentals,
            bytes_accessed=bytes_accessed,
        ),
    )(q, k, v)


def _reference(q, k, v):
    H = q.shape[1]
    score = jnp.einsum("bhsd,bhse->bhde", q, k) / math.sqrt(H)
    score = jax.nn.softmax(score, axis=-1)
    return jnp.einsum("bhde,bhse->bhds", score, v)


if __name__ == "__main__":
    # Small shapes consistent with the module: B=2, heads=4, seq=8, emb=32.
    B, H, S, D = 2, 4, 8, 32
    key = jax.random.PRNGKey(0)
    kq, kk, kv = jax.random.split(key, 3)
    q = jax.random.normal(kq, (B, H, S, D), dtype=jnp.float32)
    k = jax.random.normal(kk, (B, H, S, D), dtype=jnp.float32)
    v = jax.random.normal(kv, (B, H, S, D), dtype=jnp.float32)

    out = attention(q, k, v)
    out = jax.block_until_ready(out)

    ref = _reference(q, k, v)
    assert out.shape == (B, H, D, S), out.shape
    assert jnp.allclose(out, ref, atol=1e-5, rtol=1e-5), float(jnp.max(jnp.abs(out - ref)))
    print("KERNEL_OK")
</pallas_src>

<mosaic_0001>
module attributes {stable_mosaic.version = 11 : i64} {
  func.func @_attention_kernel(%arg0: memref<2x4x8x32xf32, #tpu.memory_space<vmem>>, %arg1: memref<2x4x8x32xf32, #tpu.memory_space<vmem>>, %arg2: memref<2x4x8x32xf32, #tpu.memory_space<vmem>>, %arg3: memref<2x4x32x8xf32, #tpu.memory_space<vmem>>) attributes {dimension_semantics = [], scalar_prefetch = 0 : i64, scratch_operands = 0 : i64, tpu.core_type = #tpu.core_type<tc>} {
    %c0 = arith.constant 0 : index
    %c0_0 = arith.constant 0 : index
    %c0_1 = arith.constant 0 : index
    %c0_2 = arith.constant 0 : index
    %0 = vector.load %arg0[%c0, %c0_0, %c0_1, %c0_2] : memref<2x4x8x32xf32, #tpu.memory_space<vmem>>, vector<2x4x8x32xf32>
    %cst = arith.constant 5.000000e-01 : f32
    %1 = vector.broadcast %cst : f32 to vector<2x4x8x32xf32>
    %2 = arith.mulf %0, %1 : vector<2x4x8x32xf32>
    %3 = vector.shape_cast %2 : vector<2x4x8x32xf32> to vector<8x8x32xf32>
    %c0_3 = arith.constant 0 : index
    %c0_4 = arith.constant 0 : index
    %c0_5 = arith.constant 0 : index
    %c0_6 = arith.constant 0 : index
    %4 = vector.load %arg1[%c0_3, %c0_4, %c0_5, %c0_6] : memref<2x4x8x32xf32, #tpu.memory_space<vmem>>, vector<2x4x8x32xf32>
    %5 = vector.shape_cast %4 : vector<2x4x8x32xf32> to vector<8x8x32xf32>
    %c0_7 = arith.constant 0 : index
    %c0_8 = arith.constant 0 : index
    %c0_9 = arith.constant 0 : index
    %c0_10 = arith.constant 0 : index
    %6 = vector.load %arg2[%c0_7, %c0_8, %c0_9, %c0_10] : memref<2x4x8x32xf32, #tpu.memory_space<vmem>>, vector<2x4x8x32xf32>
    %7 = vector.shape_cast %6 : vector<2x4x8x32xf32> to vector<8x8x32xf32>
    "tpu.trace_start"() <{level = 10 : i32, message = "gsd,gse->gde"}> : () -> ()
    %cst_11 = arith.constant dense<0.000000e+00> : vector<8x32x32xf32>
    %8 = tpu.matmul %3, %5, %cst_11 {dimension_numbers = #tpu.dot_dimension_numbers<[1], [1], [2], [2], [0, 0, 0, 2, 1, 2], [0], [0]>} : vector<8x8x32xf32>, vector<8x8x32xf32>, vector<8x32x32xf32> -> vector<8x32x32xf32>
    "tpu.trace_stop"() : () -> ()
    %cst_12 = arith.constant dense<0xFF800000> : vector<8x32xf32>
    %9 = vector.multi_reduction <maximumf>, %8, %cst_12 [2] : vector<8x32x32xf32> to vector<8x32xf32>
    %10 = vector.shape_cast %9 : vector<8x32xf32> to vector<8x32x1xf32>
    %11 = vector.broadcast %10 : vector<8x32x1xf32> to vector<8x32x32xf32>
    %12 = arith.subf %8, %11 : vector<8x32x32xf32>
    %13 = math.exp %12 : vector<8x32x32xf32>
    %cst_13 = arith.constant dense<0.000000e+00> : vector<8x32xf32>
    %14 = vector.multi_reduction <add>, %13, %cst_13 [2] : vector<8x32x32xf32> to vector<8x32xf32>
    %15 = vector.shape_cast %14 : vector<8x32xf32> to vector<8x32x1xf32>
    %16 = tpu.reciprocal %15 : vector<8x32x1xf32> -> vector<8x32x1xf32>
    %17 = vector.broadcast %16 : vector<8x32x1xf32> to vector<8x32x32xf32>
    %18 = arith.mulf %13, %17 : vector<8x32x32xf32>
    "tpu.trace_start"() <{level = 10 : i32, message = "gde,gse->gds"}> : () -> ()
    %cst_14 = arith.constant dense<0.000000e+00> : vector<8x32x8xf32>
    %19 = tpu.matmul %18, %7, %cst_14 {dimension_numbers = #tpu.dot_dimension_numbers<[2], [2], [1], [1], [0, 0, 0, 1, 1, 1], [0], [0]>} : vector<8x32x32xf32>, vector<8x8x32xf32>, vector<8x32x8xf32> -> vector<8x32x8xf32>
    "tpu.trace_stop"() : () -> ()
    %20 = vector.shape_cast %19 : vector<8x32x8xf32> to vector<2x4x32x8xf32>
    %c0_15 = arith.constant 0 : index
    %c0_16 = arith.constant 0 : index
    %c0_17 = arith.constant 0 : index
    %c0_18 = arith.constant 0 : index
    %21 = vector.load %arg3[%c0_15, %c0_16, %c0_17, %c0_18] : memref<2x4x32x8xf32, #tpu.memory_space<vmem>>, vector<2x4x32x8xf32>
    tpu.vector_store %arg3[%c0_15, %c0_16, %c0_17, %c0_18], %20 {strides = array<i32>} : memref<2x4x32x8xf32, #tpu.memory_space<vmem>>, vector<2x4x32x8xf32>,
    return
  }
}

</mosaic_0001>

<bundles_post_ra>
// kernel: tpu_custom_call.1
= control target key start
LH: loop header
LB: loop body
LE: loop exit
PB: predicated region body
PF: predicated region fallthrough
CT: control target
= control target key end

     0   :  { %8 = vsyncpa [#allocation3], 0  ;;  %s3239_s0 = inlined_call_operand.hbm [shape: f32[2,4,8,32], index: 0, kind: input, shape index: {}]   ;;  %s3240_s1 = inlined_call_operand.hbm [shape: f32[2,4,8,32], index: 1, kind: input, shape index: {}]   ;;  %s3241_s2 = inlined_call_operand.hbm [shape: f32[2,4,8,32], index: 2, kind: input, shape index: {}]   ;;  %s3242_s3 = inlined_call_operand.vmem [shape: f32[2,4,32,8], index: 3, kind: output, shape index: {}]  }
   0x1   :  { %9 = vsyncpa [#allocation5], 0  ;;  %s27_s14 = sshll.u32 %s3240_s1, 4  ;;  %s2119_s15 = smov [#allocation4]   ;;  %s28_s14 = int_to_ptr.hbm [resolvable:$true] %s27_s14 }
   0x2   :  { %s29_s16 = sshll.u32 %s2119_s15, 4  ;;  %s14_s19 = sshll.u32 %s3239_s0, 4  ;;  %s30_s16 = int_to_ptr.vmem [resolvable:$true] %s29_s16  ;;  %s15_s19 = int_to_ptr.hbm [resolvable:$true] %s14_s19 }
   0x3   :  { %s2120_s20 = smov 128   ;;  %s2121_s21 = smov 8  }
   0x4   :  { %35 = dma.hbm_to_vmem [thread:$0]  %s28_s14, 1024, %s30_s16, [#allocation5], %s2120_s20, %s2120_s20, %s2121_s21  }
   0x5   :  { %s2122_s22 = smov [#allocation2]   ;;  %s40_s26 = sshll.u32 %s3241_s2, 4  ;;  %s41_s26 = int_to_ptr.hbm [resolvable:$true] %s40_s26 }
   0x6   :  { %s16_s23 = sshll.u32 %s2122_s22, 4  ;;  %s2123_s1 = smov [#allocation6]   ;;  %s17_s23 = int_to_ptr.vmem [resolvable:$true] %s16_s23 }
   0x7   :  { %22 = dma.hbm_to_vmem [thread:$0]  %s15_s19, 1024, %s17_s23, [#allocation3], %s2120_s20, %s2120_s20, %s2121_s21  }
   0x8   :  { %s42_s27 = sshll.u32 %s2123_s1, 4  ;;  %s43_s27 = int_to_ptr.vmem [resolvable:$true] %s42_s27 }
   0x9   :  { %48 = dma.hbm_to_vmem [thread:$0]  %s41_s26, 1024, %s43_s27, [#allocation5], %s2120_s20, %s2120_s20, %s2121_s21  }
   0xa   :  { %2115 = dma.done.wait [#allocation3], 1024  }
   0xb   :  { %2116 = vsyncadd [#allocation3], 4294966272 }
   0xc   :  { %2117 = dma.done.wait [#allocation5], 2048  }
   0xd   :  { %2118 = vsyncadd [#allocation5], 4294965248  ;;  %v63_v0 = vld [vmem:[#allocation2 + $0x10] sm:$0xff]  ;;  %v61_v1 = vld [vmem:[#allocation2] sm:$0xff]  ;;  %vm125_vm0 = vcmask 64512   ;;  %vm678_vm1 = vcmask 261120  }
   0xe   :  { %v71_v2 = vmul.f32 0.5, %v63_v0  ;;  %v69_v3 = vmul.f32 0.5, %v61_v1  ;;  %v67_v4 = vld [vmem:[#allocation2 + $0x30] sm:$0xff]  ;;  %v64_v6 = vld [vmem:[#allocation2 + $0x18] sm:$0xff]  ;;  %v62_v7 = vld [vmem:[#allocation2 + $0x8] sm:$0xff] }
   0xf   :  { %v75_v5 = vmul.f32 0.5, %v67_v4  ;;  %v72_v8 = vmul.f32 0.5, %v64_v6  ;;  %v70_v9 = vmul.f32 0.5, %v62_v7  ;;  %v68_v10 = vld [vmem:[#allocation2 + $0x38] sm:$0xff]  ;;  %v77_v11 = vld [vmem:[#allocation4] sm:$0xff]  ;;  %v79_v13 = vld [vmem:[#allocation4 + $0x10] sm:$0xff] }
  0x10   :  { %240 = vxpose.xlu0.b32.start.end [1/1] (short) (narrow) %v71_v2, 32  ;;  %93 = vxpose.xlu1.b32.start.end [1/1] (short) (narrow) %v69_v3, 32  ;;  %v76_v12 = vmul.f32 0.5, %v68_v10  ;;  %v65_v14 = vld [vmem:[#allocation2 + $0x20] sm:$0xff]  ;;  %v66_v15 = vld [vmem:[#allocation2 + $0x28] sm:$0xff]  ;;  %v80_v19 = vld [vmem:[#allocation4 + $0x18] sm:$0xff] }
  0x11   :  { %532 = vxpose.xlu2.b32.start.end [1/1] (short) (narrow) %v75_v5, 32  ;;  %153 = vmatpush.msra.mxu0 %v77_v11  ;;  %v73_v16 = vmul.f32 0.5, %v65_v14  ;;  %v74_v17 = vmul.f32 0.5, %v66_v15  ;;  %v78_v18 = vld [vmem:[#allocation4 + $0x8] sm:$0xff]  ;;  %v83_v24 = vld [vmem:[#allocation4 + $0x30] sm:$0xff]  ;;  %v84_v25 = vld [vmem:[#allocation4 + $0x38] sm:$0xff] }
  0x12   :  { %299 = vmatpush.msra.mxu2 %v79_v13  ;;  %226 = vmatpush.msra.mxu1 %v78_v18  ;;  %v81_v29 = vld [vmem:[#allocation4 + $0x20] sm:$0xff]  ;;  %v82_v30 = vld [vmem:[#allocation4 + $0x28] sm:$0xff] }
  0x13   :  { %372 = vmatpush.msra.mxu3 %v80_v19  ;;  %445 = vmatpush.msrb.mxu0 %v81_v29 }
  0x14   :  { %591 = vmatpush.msrb.mxu2 %v83_v24  ;;  %518 = vmatpush.msrb.mxu1 %v82_v30 }
  0x15   :  { %664 = vmatpush.msrb.mxu3 %v84_v25 }
  0x30   :  { %313 = vxpose.xlu0.b32.start.end [1/1] (short) (narrow) %v72_v8, 32  ;;  %167 = vxpose.xlu1.b32.start.end [1/1] (short) (narrow) %v70_v9, 32 }
  0x31   :  { %605 = vxpose.xlu2.b32.start.end [1/1] (short) (narrow) %v76_v12, 32 }
  0x50   :  { %386 = vxpose.xlu0.b32.start.end [1/1] (short) (narrow) %v73_v16, 32  ;;  %459 = vxpose.xlu1.b32.start.end [1/1] (short) (narrow) %v74_v17, 32 }
  0xaa   :  { %v548_v28 = vpop.trf.xlu2 }
  0xb2   :  { %v549_v33 = vpop.trf.xlu2 }
  0xb4   :  { %v256_v20 = vpop.trf.xlu0  ;;  %v109_v21 = vpop.trf.xlu1 }
  0xb5   :  { %1837 = vmatmul.msk.f32.vlgmr.msra.gmra.mxu0 %vm125_vm0, %v109_v21  ;;  %1845 = vmatmul.msk.f32.vlgmr.msra.gmra.mxu2 %vm125_vm0, %v256_v20 }
  0xba   :  { %v550_v36 = vpop.trf.xlu2 }
  0xbc   :  { %v257_v22 = vpop.trf.xlu0  ;;  %v110_v23 = vpop.trf.xlu1 }
  0xbd   :  { %1838 = vmatmul.msk.f32.gmra.mxu0 %vm125_vm0, %v110_v23  ;;  %1846 = vmatmul.msk.f32.gmra.mxu2 %vm125_vm0, %v257_v22 }
  0xc2   :  { %v551_v39 = vpop.trf.xlu2 }
  0xc4   :  { %v258_v26 = vpop.trf.xlu0  ;;  %v111_v27 = vpop.trf.xlu1 }
  0xc5   :  { %1839 = vmatmul.msk.f32.gmra.mxu0 %vm125_vm0, %v111_v27  ;;  %1847 = vmatmul.msk.f32.gmra.mxu2 %vm125_vm0, %v258_v26 }
  0xca   :  { %v621_v44 = vpop.trf.xlu2 }
  0xcc   :  { %v259_v31 = vpop.trf.xlu0  ;;  %v112_v32 = vpop.trf.xlu1 }
  0xcd   :  { %1840 = vmatmul.msk.f32.gmra.mxu0 %vm125_vm0, %v112_v32  ;;  %1848 = vmatmul.msk.f32.gmra.mxu2 %vm125_vm0, %v259_v31 }
  0xd2   :  { %v622_v47 = vpop.trf.xlu2 }
  0xd4   :  { %v329_v34 = vpop.trf.xlu0  ;;  %v183_v35 = vpop.trf.xlu1 }
  0xd5   :  { %1841 = vmatmul.msk.f32.vlgmr.msra.gmra.mxu1 %vm125_vm0, %v183_v35  ;;  %1849 = vmatmul.msk.f32.vlgmr.msra.gmra.mxu3 %vm125_vm0, %v329_v34 }
  0xd6   :  { %1861 = vmatmul.msk.f32.vlgmr.msrb.gmra.mxu2 %vm125_vm0, %v548_v28 }
  0xda   :  { %v623_v50 = vpop.trf.xlu2 }
  0xdc   :  { %v330_v37 = vpop.trf.xlu0  ;;  %v184_v38 = vpop.trf.xlu1 }
  0xdd   :  { %1850 = vmatmul.msk.f32.gmra.mxu3 %vm125_vm0, %v330_v37  ;;  %1842 = vmatmul.msk.f32.gmra.mxu1 %vm125_vm0, %v184_v38 }
  0xde   :  { %1862 = vmatmul.msk.f32.gmra.mxu2 %vm125_vm0, %v549_v33 }
  0xe2   :  { %v624_v53 = vpop.trf.xlu2 }
  0xe4   :  { %v331_v40 = vpop.trf.xlu0  ;;  %v185_v41 = vpop.trf.xlu1 }
  0xe5   :  { %1851 = vmatmul.msk.f32.gmra.mxu3 %vm125_vm0, %v331_v40  ;;  %1843 = vmatmul.msk.f32.gmra.mxu1 %vm125_vm0, %v185_v41 }
  0xe6   :  { %1863 = vmatmul.msk.f32.gmra.mxu2 %vm125_vm0, %v550_v36 }
  0xec   :  { %v332_v42 = vpop.trf.xlu0  ;;  %v186_v43 = vpop.trf.xlu1 }
  0xed   :  { %1852 = vmatmul.msk.f32.gmra.mxu3 %vm125_vm0, %v332_v42  ;;  %1844 = vmatmul.msk.f32.gmra.mxu1 %vm125_vm0, %v186_v43 }
  0xee   :  { %1864 = vmatmul.msk.f32.gmra.mxu2 %vm125_vm0, %v551_v39 }
  0xf4   :  { %v402_v45 = vpop.trf.xlu0  ;;  %v475_v46 = vpop.trf.xlu1 }
  0xf5   :  { %1865 = vmatmul.msk.f32.vlgmr.msrb.gmra.mxu3 %vm125_vm0, %v621_v44  ;;  %1853 = vmatmul.msk.f32.vlgmr.msrb.gmra.mxu0 %vm125_vm0, %v402_v45 }
  0xf6   :  { %1857 = vmatmul.msk.f32.vlgmr.msrb.gmra.mxu1 %vm125_vm0, %v475_v46 }
  0xfc   :  { %v403_v48 = vpop.trf.xlu0  ;;  %v476_v49 = vpop.trf.xlu1 }
  0xfd   :  { %1866 = vmatmul.msk.f32.gmra.mxu3 %vm125_vm0, %v622_v47  ;;  %1854 = vmatmul.msk.f32.gmra.mxu0 %vm125_vm0, %v403_v48 }
  0xfe   :  { %1858 = vmatmul.msk.f32.gmra.mxu1 %vm125_vm0, %v476_v49 }
 0x104   :  { %v404_v51 = vpop.trf.xlu0  ;;  %v477_v52 = vpop.trf.xlu1 }
 0x105   :  { %1867 = vmatmul.msk.f32.gmra.mxu3 %vm125_vm0, %v623_v50  ;;  %1855 = vmatmul.msk.f32.gmra.mxu0 %vm125_vm0, %v404_v51 }
 0x106   :  { %1859 = vmatmul.msk.f32.gmra.mxu1 %vm125_vm0, %v477_v52 }
 0x10c   :  { %v405_v54 = vpop.trf.xlu0  ;;  %v478_v55 = vpop.trf.xlu1 }
 0x10d   :  { %1868 = vmatmul.msk.f32.gmra.mxu3 %vm125_vm0, %v624_v53  ;;  %1856 = vmatmul.msk.f32.gmra.mxu0 %vm125_vm0, %v405_v54 }
 0x10e   :  { %1860 = vmatmul.msk.f32.gmra.mxu1 %vm125_vm0, %v478_v55 }
 0x132   :  { %v2185_v56 = vpop.f32.mrf.mxu0 }
 0x133   :  { %v679_v57 = vsel %vm678_vm1, %v2185_v56, -inf }
 0x134   :  { %680 = vmax.xlane.f32.xlu1 %v679_v57 }
 0x138   :  { %v2189_v58 = vpop.f32.mrf.mxu2 }
 0x139   :  { %v703_v59 = vsel %vm678_vm1, %v2189_v58, -inf }
 0x13a   :  { %704 = vmax.xlane.f32.xlu2 %v703_v59  ;;  %v2197_v62 = vpop.f32.mrf.mxu0 }
 0x13b   :  { %v682_v2 = vsel %vm678_vm1, %v2197_v62, -inf }
 0x140   :  { %v2203_v1 = vpop.f32.mrf.mxu2 }
 0x141   :  { %v706_v8 = vsel %vm678_vm1, %v2203_v1, -inf }
 0x142   :  { %v2207_v3 = vpop.f32.mrf.mxu0 }
 0x143   :  { %v685_v7 = vsel %vm678_vm1, %v2207_v3, -inf }
 0x148   :  { %v2219_v9 = vpop.f32.mrf.mxu2 }
 0x149   :  { %v709_v13 = vsel %vm678_vm1, %v2219_v9, -inf }
 0x14a   :  { %v2239_v19 = vpop.f32.mrf.mxu0 }
 0x14b   :  { %v688_v26 = vsel %vm678_vm1, %v2239_v19, -inf }
 0x150   :  { %v2229_v14 = vpop.f32.mrf.mxu2 }
 0x151   :  { %v712_v24 = vsel %vm678_vm1, %v2229_v14, -inf }
 0x152   :  { %v2193_v60 = vpop.f32.mrf.mxu1 }
 0x153   :  { %v691_v61 = vsel %vm678_vm1, %v2193_v60, -inf }
 0x154   :  { %692 = vmax.xlane.f32.xlu2 %v691_v61 }
 0x158   :  { %v2199_v63 = vpop.f32.mrf.mxu3 }
 0x159   :  { %v715_v0 = vsel %vm678_vm1, %v2199_v63, -inf  ;;  %v2243_v21 = vpop.f32.mrf.mxu2 }
 0x15a   :  { %716 = vmax.xlane.f32.xlu0 %v715_v0  ;;  %v2209_v4 = vpop.f32.mrf.mxu1  ;;  %v751_v23 = vsel %vm678_vm1, %v2243_v21, -inf }
 0x15b   :  { %v694_v10 = vsel %vm678_vm1, %v2209_v4, -inf }
 0x15c   :  { %683 = vmax.xlane.f32.xlu2 %v682_v2 }
 0x160   :  { %v2211_v5 = vpop.f32.mrf.mxu3 }
 0x161   :  { %v718_v6 = vsel %vm678_vm1, %v2211_v5, -inf  ;;  %v2271_v35 = vpop.f32.mrf.mxu2 }
 0x162   :  { %719 = vmax.xlane.f32.xlu1 %v718_v6  ;;  %686 = vmax.xlane.f32.xlu0 %v685_v7  ;;  %v2225_v12 = vpop.f32.mrf.mxu1  ;;  %v754_v36 = vsel %vm678_vm1, %v2271_v35, -inf }
 0x163   :  { %v697_v18 = vsel %vm678_vm1, %v2225_v12, -inf }
 0x164   :  { %707 = vmax.xlane.f32.xlu2 %v706_v8 }
 0x168   :  { %v2223_v11 = vpop.f32.mrf.mxu3 }
 0x169   :  { %v721_v15 = vsel %vm678_vm1, %v2223_v11, -inf  ;;  %v2285_v42 = vpop.f32.mrf.mxu2 }
 0x16a   :  { %695 = vmax.xlane.f32.xlu1 %v694_v10  ;;  %v2241_v20 = vpop.f32.mrf.mxu1  ;;  %v757_v46 = vsel %vm678_vm1, %v2285_v42, -inf }
 0x16b   :  { %v700_v28 = vsel %vm678_vm1, %v2241_v20, -inf }
 0x16c   :  { %710 = vmax.xlane.f32.xlu2 %v709_v13 }
 0x170   :  { %v2233_v16 = vpop.f32.mrf.mxu3 }
 0x171   :  { %v724_v17 = vsel %vm678_vm1, %v2233_v16, -inf  ;;  %v2299_v49 = vpop.f32.mrf.mxu2 }
 0x172   :  { %725 = vmax.xlane.f32.xlu0 %v724_v17  ;;  %722 = vmax.xlane.f32.xlu1 %v721_v15  ;;  %v2251_v25 = vpop.f32.mrf.mxu0  ;;  %v760_v51 = vsel %vm678_vm1, %v2299_v49, -inf }
 0x173   :  { %v2255_v27 = vpop.f32.mrf.mxu1  ;;  %v727_v33 = vsel %vm678_vm1, %v2251_v25, -inf }
 0x174   :  { %698 = vmax.xlane.f32.xlu2 %v697_v18  ;;  %v739_v29 = vsel %vm678_vm1, %v2255_v27, -inf }
 0x178   :  { %v2245_v22 = vpop.f32.mrf.mxu3 }
 0x179   :  { %v763_v30 = vsel %vm678_vm1, %v2245_v22, -inf }
 0x17a   :  { %752 = vmax.xlane.f32.xlu0 %v751_v23  ;;  %713 = vmax.xlane.f32.xlu1 %v712_v24  ;;  %v2265_v32 = vpop.f32.mrf.mxu0 }
 0x17b   :  { %v730_v34 = vsel %vm678_vm1, %v2265_v32, -inf  ;;  %v2277_v38 = vpop.f32.mrf.mxu1 }
 0x17c   :  { %689 = vmax.xlane.f32.xlu2 %v688_v26  ;;  %v742_v41 = vsel %vm678_vm1, %v2277_v38, -inf }
 0x180   :  { %v2263_v31 = vpop.f32.mrf.mxu3 }
 0x181   :  { %v766_v39 = vsel %vm678_vm1, %v2263_v31, -inf }
 0x182   :  { %701 = vmax.xlane.f32.xlu1 %v700_v28  ;;  %740 = vmax.xlane.f32.xlu0 %v739_v29  ;;  %v2287_v43 = vpop.f32.mrf.mxu0 }
 0x183   :  { %v2289_v44 = vpop.f32.mrf.mxu1  ;;  %v733_v45 = vsel %vm678_vm1, %v2287_v43, -inf }
 0x184   :  { %764 = vmax.xlane.f32.xlu2 %v763_v30  ;;  %v745_v47 = vsel %vm678_vm1, %v2289_v44, -inf }
 0x188   :  { %v2275_v37 = vpop.f32.mrf.mxu3 }
 0x189   :  { %v769_v40 = vsel %vm678_vm1, %v2275_v37, -inf }
 0x18a   :  { %728 = vmax.xlane.f32.xlu1 %v727_v33  ;;  %731 = vmax.xlane.f32.xlu0 %v730_v34  ;;  %v2305_v52 = vpop.f32.mrf.mxu0 }
 0x18b   :  { %v2307_v53 = vpop.f32.mrf.mxu1  ;;  %v736_v55 = vsel %vm678_vm1, %v2305_v52, -inf }
 0x18c   :  { %755 = vmax.xlane.f32.xlu2 %v754_v36  ;;  %v748_v57 = vsel %vm678_vm1, %v2307_v53, -inf }
 0x190   :  { %v2297_v48 = vpop.f32.mrf.mxu3 }
 0x191   :  { %v772_v50 = vsel %vm678_vm1, %v2297_v48, -inf }
 0x192   :  { %767 = vmax.xlane.f32.xlu1 %v766_v39  ;;  %770 = vmax.xlane.f32.xlu0 %v769_v40 }
 0x194   :  { %743 = vmax.xlane.f32.xlu2 %v742_v41 }
 0x19a   :  { %758 = vmax.xlane.f32.xlu1 %v757_v46  ;;  %734 = vmax.xlane.f32.xlu0 %v733_v45 }
 0x19c   :  { %746 = vmax.xlane.f32.xlu2 %v745_v47 }
 0x1a2   :  { %761 = vmax.xlane.f32.xlu1 %v760_v51  ;;  %773 = vmax.xlane.f32.xlu0 %v772_v50 }
 0x1a7   :  { %v681_v54 = vpop.xlane.xlu1 %680 }
 0x1a8   :  { %v775_v59 = vsub.f32 %v2185_v56, %v681_v54 }
 0x1aa   :  { %v807_v61 = vmul.f32 1.442695, %v775_v59  ;;  %737 = vmax.xlane.f32.xlu1 %v736_v55  ;;  %749 = vmax.xlane.f32.xlu0 %v748_v57 }
 0x1ac   :  { %1915 = vpow2.f32 %v807_v61 }
 0x1ad   :  { %v705_v0 = vpop.xlane.xlu2 %704 }
 0x1ae   :  { %v783_v2 = vsub.f32 %v2189_v58, %v705_v0 }
 0x1b0   :  { %v823_v6 = vmul.f32 1.442695, %v783_v2 }
 0x1b2   :  { %v2315_v7 = vpop.eup %1915  ;;  %1917 = vpow2.f32 %v823_v6 }
 0x1b3   :  { %v871_v8 = vsel %vm678_vm1, %v2315_v7, 0.0 }
 0x1b4   :  { %872 = vadd.xlane.f32.xlu2 %v871_v8 }
 0x1b8   :  { %v2319_v10 = vpop.eup %1917 }
 0x1b9   :  { %v895_v56 = vsel %vm678_vm1, %v2319_v10, 0.0 }
 0x1bc   :  { %896 = vadd.xlane.f32.xlu2 %v895_v56 }
 0x1c7   :  { %v693_v13 = vpop.xlane.xlu2 %692 }
 0x1c8   :  { %v779_v15 = vsub.f32 %v2193_v60, %v693_v13 }
 0x1ca   :  { %v815_v17 = vmul.f32 1.442695, %v779_v15 }
 0x1cc   :  { %1919 = vpow2.f32 %v815_v17 }
 0x1cd   :  { %v717_v58 = vpop.xlane.xlu0 %716 }
 0x1ce   :  { %v787_v18 = vsub.f32 %v2199_v63, %v717_v58 }
 0x1cf   :  { %v684_v23 = vpop.xlane.xlu2 %683 }
 0x1d0   :  { %v831_v24 = vmul.f32 1.442695, %v787_v18  ;;  %v776_v26 = vsub.f32 %v2197_v62, %v684_v23 }
 0x1d2   :  { %v2326_v28 = vpop.eup %1919  ;;  %1921 = vpow2.f32 %v831_v24  ;;  %v809_v29 = vmul.f32 1.442695, %v776_v26 }
 0x1d3   :  { %v883_v30 = vsel %vm678_vm1, %v2326_v28, 0.0 }
 0x1d4   :  { %1923 = vpow2.f32 %v809_v29  ;;  %884 = vadd.xlane.f32.xlu1 %v883_v30 }
 0x1d5   :  { %v720_v33 = vpop.xlane.xlu1 %719 }
 0x1d6   :  { %v788_v60 = vsub.f32 %v2211_v5, %v720_v33  ;;  %v687_v5 = vpop.xlane.xlu0 %686 }
 0x1d7   :  { %v708_v34 = vpop.xlane.xlu2 %707 }
 0x1d8   :  { %v2331_v36 = vpop.eup %1921  ;;  %v833_v63 = vmul.f32 1.442695, %v788_v60  ;;  %v784_v39 = vsub.f32 %v2203_v1, %v708_v34  ;;  %v777_v1 = vsub.f32 %v2207_v3, %v687_v5 }
 0x1d9   :  { %v907_v41 = vsel %vm678_vm1, %v2331_v36, 0.0 }
 0x1da   :  { %v2334_v40 = vpop.eup %1923  ;;  %v825_v62 = vmul.f32 1.442695, %v784_v39  ;;  %1925 = vpow2.f32 %v833_v63  ;;  %v811_v61 = vmul.f32 1.442695, %v777_v1 }
 0x1db   :  { %v874_v45 = vsel %vm678_vm1, %v2334_v40, 0.0 }
 0x1dc   :  { %1927 = vpow2.f32 %v825_v62  ;;  %908 = vadd.xlane.f32.xlu1 %v907_v41  ;;  %875 = vadd.xlane.f32.xlu2 %v874_v45 }
 0x1dd   :  { %v696_v46 = vpop.xlane.xlu1 %695 }
 0x1de   :  { %v780_v47 = vsub.f32 %v2209_v4, %v696_v46 }
 0x1df   :  { %v711_v50 = vpop.xlane.xlu2 %710 }
 0x1e0   :  { %v817_v51 = vmul.f32 1.442695, %v780_v47  ;;  %v2342_v54 = vpop.eup %1925  ;;  %v785_v17 = vsub.f32 %v2219_v9, %v711_v50 }
 0x1e1   :  { %v910_v59 = vsel %vm678_vm1, %v2342_v54, 0.0 }
 0x1e2   :  { %v2344_v55 = vpop.eup %1927  ;;  %1929 = vpow2.f32 %v817_v51  ;;  %v827_v26 = vmul.f32 1.442695, %v785_v17 }
 0x1e3   :  { %v898_v57 = vsel %vm678_vm1, %v2344_v55, 0.0  ;;  %1931 = vpow2.f32 %v811_v61 }
 0x1e4   :  { %899 = vadd.xlane.f32.xlu0 %v898_v57  ;;  %911 = vadd.xlane.f32.xlu2 %v910_v59 }
 0x1e5   :  { %v726_v0 = vpop.xlane.xlu0 %725  ;;  %v723_v4 = vpop.xlane.xlu1 %722 }
 0x1e6   :  { %v789_v2 = vsub.f32 %v2223_v11, %v723_v4  ;;  %v790_v8 = vsub.f32 %v2233_v16, %v726_v0 }
 0x1e7   :  { %v699_v3 = vpop.xlane.xlu2 %698 }
 0x1e8   :  { %v2351_v6 = vpop.eup %1929  ;;  %v835_v56 = vmul.f32 1.442695, %v789_v2  ;;  %v781_v13 = vsub.f32 %v2225_v12, %v699_v3  ;;  %v837_v18 = vmul.f32 1.442695, %v790_v8 }
 0x1e9   :  { %v886_v15 = vsel %vm678_vm1, %v2351_v6, 0.0  ;;  %v2358_v24 = vpop.eup %1931 }
 0x1ea   :  { %v819_v58 = vmul.f32 1.442695, %v781_v13  ;;  %887 = vadd.xlane.f32.xlu1 %v886_v15  ;;  %1933 = vpow2.f32 %v835_v56  ;;  %v877_v30 = vsel %vm678_vm1, %v2358_v24, 0.0 }
 0x1ec   :  { %1935 = vpow2.f32 %v819_v58 }
 0x1ed   :  { %v753_v11 = vpop.xlane.xlu0 %752  ;;  %v714_v23 = vpop.xlane.xlu1 %713  ;;  %1937 = vpow2.f32 %v837_v18 }
 0x1ee   :  { %1939 = vpow2.f32 %v827_v26  ;;  %v799_v46 = vsub.f32 %v2243_v21, %v753_v11  ;;  %v786_v1 = vsub.f32 %v2229_v14, %v714_v23 }
 0x1ef   :  { %v690_v29 = vpop.xlane.xlu2 %689 }
 0x1f0   :  { %v2360_v16 = vpop.eup %1933  ;;  %v778_v12 = vsub.f32 %v2239_v19, %v690_v29  ;;  %v829_v59 = vmul.f32 1.442695, %v786_v1 }
 0x1f1   :  { %v913_v33 = vsel %vm678_vm1, %v2360_v16, 0.0 }
 0x1f2   :  { %v2365_v9 = vpop.eup %1935  ;;  %878 = vadd.xlane.f32.xlu1 %v877_v30  ;;  %914 = vadd.xlane.f32.xlu2 %v913_v33  ;;  %v813_v34 = vmul.f32 1.442695, %v778_v12 }
 0x1f3   :  { %v889_v60 = vsel %vm678_vm1, %v2365_v9, 0.0  ;;  %v2371_v62 = vpop.eup %1937 }
 0x1f4   :  { %890 = vadd.xlane.f32.xlu0 %v889_v60  ;;  %v2375_v5 = vpop.eup %1939  ;;  %1941 = vpow2.f32 %v813_v34  ;;  %v916_v51 = vsel %vm678_vm1, %v2371_v62, 0.0 }
 0x1f5   :  { %v741_v63 = vpop.xlane.xlu0 %740  ;;  %v702_v39 = vpop.xlane.xlu1 %701 }
 0x1f6   :  { %v795_v19 = vsub.f32 %v2255_v27, %v741_v63  ;;  %v782_v41 = vsub.f32 %v2241_v20, %v702_v39  ;;  %v901_v20 = vsel %vm678_vm1, %v2375_v5, 0.0  ;;  %v855_v27 = vmul.f32 1.442695, %v799_v46 }
 0x1f7   :  { %v765_v45 = vpop.xlane.xlu2 %764 }
 0x1f8   :  { %v847_v47 = vmul.f32 1.442695, %v795_v19  ;;  %v821_v50 = vmul.f32 1.442695, %v782_v41  ;;  %v803_v57 = vsub.f32 %v2245_v22, %v765_v45 }
 0x1fa   :  { %1943 = vpow2.f32 %v847_v47  ;;  %917 = vadd.xlane.f32.xlu1 %v916_v51  ;;  %v863_v0 = vmul.f32 1.442695, %v803_v57  ;;  %v2384_v4 = vpop.eup %1941 }
 0x1fb   :  { %1945 = vpow2.f32 %v821_v50  ;;  %v880_v15 = vsel %vm678_vm1, %v2384_v4, 0.0 }
 0x1fc   :  { %902 = vadd.xlane.f32.xlu0 %v901_v20  ;;  %1947 = vpow2.f32 %v855_v27 }
 0x1fd   :  { %v732_v21 = vpop.xlane.xlu0 %731  ;;  %v729_v61 = vpop.xlane.xlu1 %728  ;;  %1949 = vpow2.f32 %v829_v59 }
 0x1fe   :  { %v792_v3 = vsub.f32 %v2265_v32, %v732_v21  ;;  %v791_v8 = vsub.f32 %v2251_v25, %v729_v61  ;;  %1951 = vpow2.f32 %v863_v0 }
 0x1ff   :  { %v756_v14 = vpop.xlane.xlu2 %755 }
 0x200   :  { %v2386_v2 = vpop.eup %1943  ;;  %v841_v17 = vmul.f32 1.442695, %v792_v3  ;;  %v839_v32 = vmul.f32 1.442695, %v791_v8  ;;  %v800_v60 = vsub.f32 %v2271_v35, %v756_v14 }
 0x201   :  { %v2389_v22 = vpop.eup %1945  ;;  %v931_v56 = vsel %vm678_vm1, %v2386_v2, 0.0 }
 0x202   :  { %932 = vadd.xlane.f32.xlu1 %v931_v56  ;;  %v892_v13 = vsel %vm678_vm1, %v2389_v22, 0.0  ;;  %v2398_v11 = vpop.eup %1947  ;;  %1953 = vpow2.f32 %v841_v17  ;;  %v857_v45 = vmul.f32 1.442695, %v800_v60  ;;  %v85_v56 = vld [vmem:[#allocation6] sm:$0xff] }
 0x203   :  { %893 = vadd.xlane.f32.xlu2 %v892_v13  ;;  %v2400_v25 = vpop.eup %1949  ;;  %1955 = vpow2.f32 %v839_v32  ;;  %v943_v33 = vsel %vm678_vm1, %v2398_v11, 0.0  ;;  %1869 = vmatpush.xpose.msk.msra.mxu0 %vm678_vm1, %v85_v56 }
 0x204   :  { %881 = vadd.xlane.f32.xlu0 %v880_v15  ;;  %v2402_v26 = vpop.eup %1951  ;;  %v904_v63 = vsel %vm678_vm1, %v2400_v25, 0.0 }
 0x205   :  { %v771_v58 = vpop.xlane.xlu0 %770  ;;  %v768_v18 = vpop.xlane.xlu1 %767  ;;  %v955_v39 = vsel %vm678_vm1, %v2402_v26, 0.0 }
 0x206   :  { %v805_v29 = vsub.f32 %v2275_v37, %v771_v58  ;;  %v804_v30 = vsub.f32 %v2263_v31, %v768_v18 }
 0x207   :  { %v744_v23 = vpop.xlane.xlu2 %743 }
 0x208   :  { %v796_v12 = vsub.f32 %v2277_v38, %v744_v23  ;;  %v867_v37 = vmul.f32 1.442695, %v805_v29  ;;  %v865_v38 = vmul.f32 1.442695, %v804_v30  ;;  %v2414_v41 = vpop.eup %1953  ;;  %v87_v30 = vld [vmem:[#allocation6 + $0x10] sm:$0xff] }
 0x209   :  { %v2416_v46 = vpop.eup %1955  ;;  %v922_v47 = vsel %vm678_vm1, %v2414_v41, 0.0  ;;  %1879 = vmatpush.xpose.msk.msra.mxu2 %vm678_vm1, %v87_v30 }
 0x20a   :  { %v849_v34 = vmul.f32 1.442695, %v796_v12  ;;  %944 = vadd.xlane.f32.xlu1 %v943_v33  ;;  %v919_v51 = vsel %vm678_vm1, %v2416_v46, 0.0 }
 0x20b   :  { %905 = vadd.xlane.f32.xlu2 %v904_v63 }
 0x20c   :  { %1957 = vpow2.f32 %v849_v34  ;;  %956 = vadd.xlane.f32.xlu0 %v955_v39 }
 0x20d   :  { %v735_v19 = vpop.xlane.xlu0 %734  ;;  %v759_v31 = vpop.xlane.xlu1 %758  ;;  %1959 = vpow2.f32 %v867_v37 }
 0x20e   :  { %1961 = vpow2.f32 %v865_v38  ;;  %v801_v35 = vsub.f32 %v2285_v42, %v759_v31  ;;  %v793_v1 = vsub.f32 %v2287_v43, %v735_v19 }
 0x20f   :  { %1963 = vpow2.f32 %v857_v45  ;;  %v747_v20 = vpop.xlane.xlu2 %746 }
 0x210   :  { %v859_v27 = vmul.f32 1.442695, %v801_v35  ;;  %v843_v61 = vmul.f32 1.442695, %v793_v1  ;;  %v797_v3 = vsub.f32 %v2289_v44, %v747_v20 }
 0x212   :  { %v2421_v50 = vpop.eup %1957  ;;  %923 = vadd.xlane.f32.xlu1 %v922_v47  ;;  %1965 = vpow2.f32 %v859_v27  ;;  %v851_v17 = vmul.f32 1.442695, %v797_v3 }
 0x213   :  { %920 = vadd.xlane.f32.xlu2 %v919_v51  ;;  %v934_v57 = vsel %vm678_vm1, %v2421_v50, 0.0  ;;  %v2428_v21 = vpop.eup %1959  ;;  %1967 = vpow2.f32 %v843_v61 }
 0x214   :  { %935 = vadd.xlane.f32.xlu0 %v934_v57  ;;  %v2431_v14 = vpop.eup %1961  ;;  %v961_v15 = vsel %vm678_vm1, %v2428_v21, 0.0 }
 0x215   :  { %v774_v42 = vpop.xlane.xlu0 %773  ;;  %v762_v59 = vpop.xlane.xlu1 %761 }
 0x216   :  { %v802_v0 = vsub.f32 %v2299_v49, %v762_v59  ;;  %v2433_v43 = vpop.eup %1963  ;;  %v806_v13 = vsub.f32 %v2297_v48, %v774_v42  ;;  %v958_v49 = vsel %vm678_vm1, %v2431_v14, 0.0 }
 0x217   :  { %v946_v44 = vsel %vm678_vm1, %v2433_v43, 0.0 }
 0x218   :  { %v861_v8 = vmul.f32 1.442695, %v802_v0  ;;  %v869_v32 = vmul.f32 1.442695, %v806_v13  ;;  %v2445_v23 = vpop.eup %1965 }
 0x219   :  { %v2447_v29 = vpop.eup %1967  ;;  %v949_v34 = vsel %vm678_vm1, %v2445_v23, 0.0 }
 0x21a   :  { %962 = vadd.xlane.f32.xlu1 %v961_v15  ;;  %1969 = vpow2.f32 %v861_v8  ;;  %v925_v63 = vsel %vm678_vm1, %v2447_v29, 0.0 }
 0x21b   :  { %959 = vadd.xlane.f32.xlu2 %v958_v49  ;;  %1971 = vpow2.f32 %v851_v17  ;;  %v86_v17 = vld [vmem:[#allocation6 + $0x8] sm:$0xff] }
 0x21c   :  { %947 = vadd.xlane.f32.xlu0 %v946_v44  ;;  %1973 = vpow2.f32 %v869_v32  ;;  %1874 = vmatpush.xpose.msk.msra.mxu1 %vm678_vm1, %v86_v17 }
 0x21d   :  { %v750_v58 = vpop.xlane.xlu0 %749  ;;  %v738_v18 = vpop.xlane.xlu1 %737 }
 0x21e   :  { %v798_v48 = vsub.f32 %v2307_v53, %v750_v58  ;;  %v794_v60 = vsub.f32 %v2305_v52, %v738_v18 }
 0x220   :  { %v853_v12 = vmul.f32 1.442695, %v798_v48  ;;  %v2449_v33 = vpop.eup %1969  ;;  %v845_v39 = vmul.f32 1.442695, %v794_v60 }
 0x221   :  { %v952_v53 = vsel %vm678_vm1, %v2449_v33, 0.0  ;;  %v2459_v37 = vpop.eup %1971 }
 0x222   :  { %1975 = vpow2.f32 %v853_v12  ;;  %953 = vadd.xlane.f32.xlu1 %v952_v53  ;;  %v2461_v38 = vpop.eup %1973  ;;  %v937_v45 = vsel %vm678_vm1, %v2459_v37, 0.0  ;;  %v88_v53 = vld [vmem:[#allocation6 + $0x18] sm:$0xff] }
 0x223   :  { %950 = vadd.xlane.f32.xlu2 %v949_v34  ;;  %v964_v35 = vsel %vm678_vm1, %v2461_v38, 0.0  ;;  %1884 = vmatpush.xpose.msk.msra.mxu3 %vm678_vm1, %v88_v53 }
 0x224   :  { %926 = vadd.xlane.f32.xlu0 %v925_v63 }
 0x227   :  { %v873_v52 = vpop.xlane.xlu2 %872 }
 0x228   :  { %v2463_v19 = vpop.eup %1975  ;;  %1977 = vrcp.f32 %v873_v52  ;;  %v978_v27 = vand.u32 2147483648, %v873_v52  ;;  %v976_v61 = vand.u32 2147483647, %v873_v52  ;;  %vm972_vm3 = vweird.f32 %v873_v52 }
 0x229   :  { %1979 = vpow2.f32 %v845_v39  ;;  %v940_v31 = vsel %vm678_vm1, %v2463_v19, 0.0 }
 0x22a   :  { %941 = vadd.xlane.f32.xlu1 %v940_v31  ;;  %v979_v8 = vor.u32 1.1754944e-38, %v978_v27  ;;  %vm977_vm5 = vcmp.eq.f32.partialorder %v976_v61, 8.507059e+37 }
 0x22b   :  { %938 = vadd.xlane.f32.xlu2 %v937_v45 }
 0x22c   :  { %965 = vadd.xlane.f32.xlu0 %v964_v35 }
 0x22e   :  { %v1978_v47 = vpop.eup %1977 }
 0x22f   :  { %v2471_v1 = vpop.eup %1979  ;;  %v968_v51 = vmul.f32 %v1978_v47, %v873_v52  ;;  %v897_v57 = vpop.xlane.xlu2 %896  ;;  %vm973_vm2 = vweird.f32 %v1978_v47 }
 0x230   :  { %1981 = vrcp.f32 %v897_v57  ;;  %v928_v42 = vsel %vm678_vm1, %v2471_v1, 0.0  ;;  %vm974_vm4 = vmor %vm972_vm3, %vm973_vm2  ;;  %v1090_v32 = vand.u32 2147483648, %v897_v57  ;;  %v1088_v48 = vand.u32 2147483647, %v897_v57 }
 0x231   :  { %v969_v20 = vsub.f32 1.0, %v968_v51  ;;  %vm1084_vm7 = vweird.f32 %v897_v57 }
 0x232   :  { %v1091_v12 = vor.u32 1.1754944e-38, %v1090_v32  ;;  %vm1089_vm9 = vcmp.eq.f32.partialorder %v1088_v48, 8.507059e+37 }
 0x233   :  { %v970_v59 = vmul.f32 %v1978_v47, %v969_v20  ;;  %929 = vadd.xlane.f32.xlu2 %v928_v42 }
 0x235   :  { %v971_v0 = vadd.f32 %v1978_v47, %v970_v59 }
 0x236   :  { %v1982_v3 = vpop.eup %1981 }
 0x237   :  { %v975_v56 = vsel %vm974_vm4, %v1978_v47, %v971_v0  ;;  %v1080_v13 = vmul.f32 %v1982_v3, %v897_v57  ;;  %vm1085_vm6 = vweird.f32 %v1982_v3 }
 0x238   :  { %v980_v15 = vsel %vm977_vm5, %v979_v8, %v975_v56  ;;  %vm1086_vm8 = vmor %vm1084_vm7, %vm1085_vm6 }
 0x239   :  { %v1081_v49 = vsub.f32 1.0, %v1080_v13  ;;  %v1415_v44 = vmul.f32 %v2315_v7, %v980_v15 }
 0x23b   :  { %v1082_v58 = vmul.f32 %v1982_v3, %v1081_v49  ;;  %1870 = vmatmul.msk.f32.vlgmr.msra.gmra.mxu0 %vm678_vm1, %v1415_v44 }
 0x23d   :  { %v1083_v18 = vadd.f32 %v1982_v3, %v1082_v58 }
 0x23f   :  { %v1087_v30 = vsel %vm1086_vm8, %v1982_v3, %v1083_v18 }
 0x240   :  { %v1092_v60 = vsel %vm1089_vm9, %v1091_v12, %v1087_v30 }
 0x241   :  { %v1423_v34 = vmul.f32 %v2319_v10, %v1092_v60 }
 0x243   :  { %1880 = vmatmul.msk.f32.vlgmr.msra.gmra.mxu2 %vm678_vm1, %v1423_v34 }
 0x247   :  { %v885_v7 = vpop.xlane.xlu1 %884 }
 0x248   :  { %1983 = vrcp.f32 %v885_v7  ;;  %v1034_v35 = vand.u32 2147483648, %v885_v7  ;;  %v1032_v51 = vand.u32 2147483647, %v885_v7  ;;  %vm1028_vm11 = vweird.f32 %v885_v7 }
 0x24a   :  { %v1035_v20 = vor.u32 1.1754944e-38, %v1034_v35  ;;  %vm1033_vm13 = vcmp.eq.f32.partialorder %v1032_v51, 8.507059e+37 }
 0x24e   :  { %v1984_v63 = vpop.eup %1983 }
 0x24f   :  { %v1024_v39 = vmul.f32 %v1984_v63, %v885_v7  ;;  %v876_v52 = vpop.xlane.xlu2 %875  ;;  %v909_v31 = vpop.xlane.xlu1 %908  ;;  %vm1029_vm10 = vweird.f32 %v1984_v63 }
 0x250   :  { %1985 = vrcp.f32 %v876_v52  ;;  %vm1030_vm12 = vmor %vm1028_vm11, %vm1029_vm10  ;;  %v992_v13 = vand.u32 2147483648, %v876_v52  ;;  %v1146_v17 = vand.u32 2147483648, %v909_v31  ;;  %v990_v32 = vand.u32 2147483647, %v876_v52 }
 0x251   :  { %v1025_v45 = vsub.f32 1.0, %v1024_v39  ;;  %1987 = vrcp.f32 %v909_v31  ;;  %v1144_v48 = vand.u32 2147483647, %v909_v31  ;;  %vm986_vm2 = vweird.f32 %v876_v52 }
 0x252   :  { %v993_v60 = vor.u32 1.1754944e-38, %v992_v13  ;;  %vm1140_vm3 = vweird.f32 %v909_v31  ;;  %v1147_v53 = vor.u32 1.1754944e-38, %v1146_v17  ;;  %vm991_vm6 = vcmp.eq.f32.partialorder %v990_v32, 8.507059e+37 }
 0x253   :  { %v1026_v47 = vmul.f32 %v1984_v63, %v1025_v45  ;;  %vm1145_vm7 = vcmp.eq.f32.partialorder %v1144_v48, 8.507059e+37 }
 0x255   :  { %v1027_v57 = vadd.f32 %v1984_v63, %v1026_v47 }
 0x256   :  { %v1986_v10 = vpop.eup %1985 }
 0x257   :  { %v1988_v27 = vpop.eup %1987  ;;  %v1031_v42 = vsel %vm1030_vm12, %v1984_v63, %v1027_v57  ;;  %v982_v59 = vmul.f32 %v1986_v10, %v876_v52  ;;  %v2481_v61 = vpop.xlane.xlu0 %899  ;;  %vm987_vm14 = vweird.f32 %v1986_v10 }
 0x258   :  { %v2483_v0 = vpop.xlane.xlu2 %911  ;;  %v1036_v3 = vsel %vm1033_vm13, %v1035_v20, %v1031_v42  ;;  %v1136_v8 = vmul.f32 %v1988_v27, %v909_v31  ;;  %1989 = vrcp.f32 %v2481_v61  ;;  %vm1141_vm15 = vweird.f32 %v1988_v27  ;;  %vm988_vm4 = vmor %vm986_vm2, %vm987_vm14 }
 0x259   :  { %v983_v56 = vsub.f32 1.0, %v982_v59  ;;  %1991 = vrcp.f32 %v2483_v0  ;;  %v1419_v49 = vmul.f32 %v2326_v28, %v1036_v3  ;;  %vm1142_vm5 = vmor %vm1140_vm3, %vm1141_vm15  ;;  %v1104_v42 = vand.u32 2147483648, %v2481_v61 }
 0x25a   :  { %v1137_v15 = vsub.f32 1.0, %v1136_v8  ;;  %v1160_v59 = vand.u32 2147483648, %v2483_v0  ;;  %v1102_v3 = vand.u32 2147483647, %v2481_v61  ;;  %v1158_v8 = vand.u32 2147483647, %v2483_v0 }
 0x25b   :  { %v984_v44 = vmul.f32 %v1986_v10, %v983_v56  ;;  %1875 = vmatmul.msk.f32.vlgmr.msra.gmra.mxu1 %vm678_vm1, %v1419_v49  ;;  %vm1098_vm10 = vweird.f32 %v2481_v61  ;;  %vm1154_vm11 = vweird.f32 %v2483_v0  ;;  %v91_v49 = vld [vmem:[#allocation6 + $0x30] sm:$0xff]  ;;  %v1105_v17 = vor.u32 1.1754944e-38, %v1104_v42 }
 0x25c   :  { %v1138_v58 = vmul.f32 %v1988_v27, %v1137_v15  ;;  %v1161_v32 = vor.u32 1.1754944e-38, %v1160_v59  ;;  %1899 = vmatpush.xpose.msk.msrb.mxu2 %vm678_vm1, %v91_v49  ;;  %vm1103_vm13 = vcmp.eq.f32.partialorder %v1102_v3, 8.507059e+37  ;;  %vm1159_vm15 = vcmp.eq.f32.partialorder %v1158_v8, 8.507059e+37  ;;  %v89_v8 = vld [vmem:[#allocation6 + $0x20] sm:$0xff] }
 0x25d   :  { %v2489_v18 = vpop.xlane.xlu1 %887  ;;  %v985_v12 = vadd.f32 %v1986_v10, %v984_v44  ;;  %v92_v44 = vld [vmem:[#allocation6 + $0x38] sm:$0xff]  ;;  %1889 = vmatpush.xpose.msk.msrb.mxu0 %vm678_vm1, %v89_v8 }
 0x25e   :  { %v1990_v30 = vpop.eup %1989  ;;  %v1139_v34 = vadd.f32 %v1988_v27, %v1138_v58  ;;  %1993 = vrcp.f32 %v2489_v18  ;;  %1904 = vmatpush.xpose.msk.msrb.mxu3 %vm678_vm1, %v92_v44  ;;  %vm1042_vm3 = vweird.f32 %v2489_v18 }
 0x25f   :  { %v1992_v28 = vpop.eup %1991  ;;  %v1094_v7 = vmul.f32 %v1990_v30, %v2481_v61  ;;  %v989_v63 = vsel %vm988_vm4, %v1986_v10, %v985_v12  ;;  %vm1099_vm8 = vweird.f32 %v1990_v30  ;;  %v1048_v61 = vand.u32 2147483648, %v2489_v18 }
 0x260   :  { %v1143_v39 = vsel %vm1142_vm5, %v1988_v27, %v1139_v34  ;;  %v1150_v52 = vmul.f32 %v1992_v28, %v2483_v0  ;;  %v994_v45 = vsel %vm991_vm6, %v993_v60, %v989_v63  ;;  %vm1155_vm9 = vweird.f32 %v1992_v28  ;;  %vm1100_vm12 = vmor %vm1098_vm10, %vm1099_vm8 }
 0x261   :  { %v1148_v35 = vsel %vm1145_vm7, %v1147_v53, %v1143_v39  ;;  %v1095_v47 = vsub.f32 1.0, %v1094_v7  ;;  %v1416_v51 = vmul.f32 %v2334_v40, %v994_v45  ;;  %vm1156_vm14 = vmor %vm1154_vm11, %vm1155_vm9  ;;  %v1046_v63 = vand.u32 2147483647, %v2489_v18 }
 0x262   :  { %v1151_v31 = vsub.f32 1.0, %v1150_v52  ;;  %v1427_v57 = vmul.f32 %v2331_v36, %v1148_v35 }
 0x263   :  { %v1096_v20 = vmul.f32 %v1990_v30, %v1095_v47  ;;  %1871 = vmatmul.msk.f32.gmra.mxu0 %vm678_vm1, %v1416_v51  ;;  %vm1047_vm5 = vcmp.eq.f32.partialorder %v1046_v63, 8.507059e+37 }
 0x264   :  { %v1994_v10 = vpop.eup %1993  ;;  %v1152_v27 = vmul.f32 %v1992_v28, %v1151_v31  ;;  %1885 = vmatmul.msk.f32.vlgmr.msra.gmra.mxu3 %vm678_vm1, %v1427_v57 }
 0x265   :  { %v1038_v40 = vmul.f32 %v1994_v10, %v2489_v18  ;;  %v2503_v56 = vpop.xlane.xlu1 %878  ;;  %v1097_v36 = vadd.f32 %v1990_v30, %v1096_v20  ;;  %v2507_v13 = vpop.xlane.xlu2 %914  ;;  %vm1043_vm2 = vweird.f32 %v1994_v10 }
 0x266   :  { %1995 = vrcp.f32 %v2503_v56  ;;  %v1153_v15 = vadd.f32 %v1992_v28, %v1152_v27  ;;  %vm2527_vm4 = vmor %vm1042_vm3, %vm1043_vm2  ;;  %vm1000_vm6 = vweird.f32 %v2503_v56  ;;  %vm1168_vm8 = vweird.f32 %v2507_v13 }
 0x267   :  { %v1039_v58 = vsub.f32 1.0, %v1038_v40  ;;  %1997 = vrcp.f32 %v2507_v13  ;;  %v2511_v48 = vpop.xlane.xlu0 %890  ;;  %v1101_v60 = vsel %vm1100_vm12, %v1990_v30, %v1097_v36  ;;  %v90_v40 = vld [vmem:[#allocation6 + $0x28] sm:$0xff] }
 0x268   :  { %1999 = vrcp.f32 %v2511_v48  ;;  %v1157_v34 = vsel %vm1156_vm14, %v1992_v28, %v1153_v15  ;;  %v1106_v53 = vsel %vm1103_vm13, %v1105_v17, %v1101_v60  ;;  %v1049_v28 = vor.u32 1.1754944e-38, %v1048_v61  ;;  %1894 = vmatpush.xpose.msk.msrb.mxu1 %vm678_vm1, %v90_v40 }
 0x269   :  { %v1040_v12 = vmul.f32 %v1994_v10, %v1039_v58  ;;  %v1162_v7 = vsel %vm1159_vm15, %v1161_v32, %v1157_v34  ;;  %v1424_v39 = vmul.f32 %v2344_v55, %v1106_v53  ;;  %v1006_v15 = vand.u32 2147483648, %v2503_v56 }
 0x26a   :  { %v1428_v52 = vmul.f32 %v2342_v54, %v1162_v7  ;;  %v1174_v17 = vand.u32 2147483648, %v2507_v13  ;;  %v1062_v32 = vand.u32 2147483648, %v2511_v48  ;;  %v1004_v58 = vand.u32 2147483647, %v2503_v56 }
 0x26b   :  { %v1041_v45 = vadd.f32 %v1994_v10, %v1040_v12  ;;  %1881 = vmatmul.msk.f32.gmra.mxu2 %vm678_vm1, %v1424_v39  ;;  %v1172_v60 = vand.u32 2147483647, %v2507_v13  ;;  %v1060_v34 = vand.u32 2147483647, %v2511_v48  ;;  %vm1056_vm12 = vweird.f32 %v2511_v48 }
 0x26c   :  { %v2525_v35 = vpop.eup %1995  ;;  %1886 = vmatmul.msk.f32.gmra.mxu3 %vm678_vm1, %v1428_v52  ;;  %vm1005_vm14 = vcmp.eq.f32.partialorder %v1004_v58, 8.507059e+37 }
 0x26d   :  { %v2531_v30 = vpop.eup %1997  ;;  %v996_v47 = vmul.f32 %v2525_v35, %v2503_v56  ;;  %v2537_v55 = vpop.xlane.xlu1 %917  ;;  %v1045_v54 = vsel %vm2527_vm4, %v1994_v10, %v1041_v45  ;;  %vm1001_vm7 = vweird.f32 %v2525_v35  ;;  %vm1173_vm2 = vcmp.eq.f32.partialorder %v1172_v60, 8.507059e+37 }
 0x26e   :  { %v2541_v18 = vpop.eup %1999  ;;  %v1164_v51 = vmul.f32 %v2531_v30, %v2507_v13  ;;  %2001 = vrcp.f32 %v2537_v55  ;;  %v1050_v42 = vsel %vm1047_vm5, %v1049_v28, %v1045_v54  ;;  %vm1169_vm9 = vweird.f32 %v2531_v30  ;;  %vm2582_vm10 = vmor %vm1000_vm6, %vm1001_vm7 }
 0x26f   :  { %v997_v31 = vsub.f32 1.0, %v996_v47  ;;  %v1052_v57 = vmul.f32 %v2541_v18, %v2511_v48  ;;  %v2548_v20 = vpop.xlane.xlu0 %902  ;;  %v1420_v3 = vmul.f32 %v2351_v6, %v1050_v42  ;;  %vm1057_vm11 = vweird.f32 %v2541_v18  ;;  %vm1170_vm13 = vmor %vm1168_vm8, %vm1169_vm9 }
 0x270   :  { %v1165_v59 = vsub.f32 1.0, %v1164_v51  ;;  %2003 = vrcp.f32 %v2548_v20  ;;  %v1007_v47 = vor.u32 1.1754944e-38, %v1006_v15  ;;  %v1175_v54 = vor.u32 1.1754944e-38, %v1174_v17  ;;  %vm1058_vm15 = vmor %vm1056_vm12, %vm1057_vm11 }
 0x271   :  { %v998_v10 = vmul.f32 %v2525_v35, %v997_v31  ;;  %v1053_v27 = vsub.f32 1.0, %v1052_v57  ;;  %1876 = vmatmul.msk.f32.gmra.mxu1 %vm678_vm1, %v1420_v3  ;;  %v1063_v51 = vor.u32 1.1754944e-38, %v1062_v32  ;;  %vm1061_vm3 = vcmp.eq.f32.partialorder %v1060_v34, 8.507059e+37 }
 0x272   :  { %v1166_v36 = vmul.f32 %v2531_v30, %v1165_v59  ;;  %vm1182_vm4 = vweird.f32 %v2537_v55  ;;  %v1116_v63 = vand.u32 2147483647, %v2548_v20  ;;  %vm1112_vm7 = vweird.f32 %v2548_v20 }
 0x273   :  { %v1054_v49 = vmul.f32 %v2541_v18, %v1053_v27  ;;  %v999_v44 = vadd.f32 %v2525_v35, %v998_v10 }
 0x274   :  { %v2562_v6 = vpop.eup %2001  ;;  %v1167_v39 = vadd.f32 %v2531_v30, %v1166_v36 }
 0x275   :  { %v1178_v61 = vmul.f32 %v2562_v6, %v2537_v55  ;;  %v2570_v12 = vpop.xlane.xlu1 %932  ;;  %v1055_v52 = vadd.f32 %v2541_v18, %v1054_v49  ;;  %v1003_v56 = vsel %vm2582_vm10, %v2525_v35, %v999_v44  ;;  %vm1183_vm5 = vweird.f32 %v2562_v6 }
 0x276   :  { %v2575_v53 = vpop.eup %2003  ;;  %v2577_v7 = vpop.xlane.xlu2 %893  ;;  %2005 = vrcp.f32 %v2570_v12  ;;  %v1008_v57 = vsel %vm1005_vm14, %v1007_v47, %v1003_v56  ;;  %v1171_v42 = vsel %vm1170_vm13, %v2531_v30, %v1167_v39  ;;  %v1188_v30 = vand.u32 2147483648, %v2537_v55  ;;  %vm1184_vm8 = vmor %vm1182_vm4, %vm1183_vm5 }
 0x277   :  { %v1179_v45 = vsub.f32 1.0, %v1178_v61  ;;  %v1108_v0 = vmul.f32 %v2575_v53, %v2548_v20  ;;  %2007 = vrcp.f32 %v2577_v7  ;;  %v2592_v28 = vpop.xlane.xlu0 %881  ;;  %v1059_v35 = vsel %vm1058_vm15, %v2541_v18, %v1055_v52 }
 0x278   :  { %2009 = vrcp.f32 %v2592_v28  ;;  %v1417_v59 = vmul.f32 %v2358_v24, %v1008_v57  ;;  %v1176_v10 = vsel %vm1173_vm2, %v1175_v54, %v1171_v42  ;;  %v1064_v8 = vsel %vm1061_vm3, %v1063_v51, %v1059_v35 }
 0x279   :  { %v1109_v31 = vsub.f32 1.0, %v1108_v0  ;;  %v1180_v48 = vmul.f32 %v2562_v6, %v1179_v45  ;;  %v1429_v3 = vmul.f32 %v2360_v16, %v1176_v10  ;;  %v1421_v24 = vmul.f32 %v2365_v9, %v1064_v8 }
 0x27a   :  { %1872 = vmatmul.msk.f32.gmra.mxu0 %vm678_vm1, %v1417_v59  ;;  %v1118_v16 = vand.u32 2147483648, %v2548_v20  ;;  %v1186_v9 = vand.u32 2147483647, %v2537_v55  ;;  %vm1113_vm6 = vweird.f32 %v2575_v53  ;;  %v1189_v60 = vor.u32 1.1754944e-38, %v1188_v30 }
 0x27b   :  { %v1110_v13 = vmul.f32 %v2575_v53, %v1109_v31  ;;  %1887 = vmatmul.msk.f32.gmra.mxu3 %vm678_vm1, %v1429_v3  ;;  %1877 = vmatmul.msk.f32.gmra.mxu1 %vm678_vm1, %v1421_v24  ;;  %v1181_v17 = vadd.f32 %v2562_v6, %v1180_v48  ;;  %v1258_v52 = vand.u32 2147483648, %v2570_v12  ;;  %vm1252_vm9 = vweird.f32 %v2570_v12  ;;  %vm2654_vm11 = vmor %vm1112_vm7, %vm1113_vm6 }
 0x27c   :  { %v2607_v27 = vpop.eup %2005  ;;  %v1119_v39 = vor.u32 1.1754944e-38, %v1118_v16  ;;  %v1256_v45 = vand.u32 2147483647, %v2570_v12  ;;  %vm1187_vm10 = vcmp.eq.f32.partialorder %v1186_v9, 8.507059e+37  ;;  %vm1070_vm12 = vweird.f32 %v2577_v7 }
 0x27d   :  { %v2611_v40 = vpop.eup %2007  ;;  %v1248_v18 = vmul.f32 %v2607_v27, %v2570_v12  ;;  %v2618_v36 = vpop.xlane.xlu1 %944  ;;  %v1111_v61 = vadd.f32 %v2575_v53, %v1110_v13  ;;  %v1185_v0 = vsel %vm1184_vm8, %v2562_v6, %v1181_v17  ;;  %v1076_v51 = vand.u32 2147483648, %v2577_v7 }
 0x27e   :  { %v2620_v15 = vpop.eup %2009  ;;  %v2625_v49 = vpop.xlane.xlu2 %905  ;;  %v1066_v32 = vmul.f32 %v2611_v40, %v2577_v7  ;;  %2011 = vrcp.f32 %v2618_v36  ;;  %v1190_v54 = vsel %vm1187_vm10, %v1189_v60, %v1185_v0  ;;  %v1020_v31 = vand.u32 2147483648, %v2592_v28 }
 0x27f   :  { %v2628_v44 = vpop.xlane.xlu0 %956  ;;  %v1249_v58 = vsub.f32 1.0, %v1248_v18  ;;  %v1010_v34 = vmul.f32 %v2620_v15, %v2592_v28  ;;  %v1115_v55 = vsel %vm2654_vm11, %v2575_v53, %v1111_v61  ;;  %vm1117_vm13 = vcmp.eq.f32.partialorder %v1116_v63, 8.507059e+37 }
 0x280   :  { %2013 = vrcp.f32 %v2628_v44  ;;  %v1067_v56 = vsub.f32 1.0, %v1066_v32  ;;  %v1259_v35 = vor.u32 1.1754944e-38, %v1258_v52  ;;  %v1132_v48 = vand.u32 2147483648, %v2625_v49 }
 0x281   :  { %2015 = vrcp.f32 %v2625_v49  ;;  %v1250_v47 = vmul.f32 %v2607_v27, %v1249_v58  ;;  %v1011_v6 = vsub.f32 1.0, %v1010_v34  ;;  %v1430_v59 = vmul.f32 %v2371_v62, %v1190_v54 }
 0x282   :  { %v1120_v10 = vsel %vm1117_vm13, %v1119_v39, %v1115_v55  ;;  %vm1253_vm14 = vweird.f32 %v2607_v27  ;;  %vm2676_vm15 = vcmp.eq.f32.partialorder %v1256_v45, 8.507059e+37  ;;  %vm1014_vm2 = vweird.f32 %v2592_v28 }
 0x283   :  { %v1314_v8 = vand.u32 2147483648, %v2618_v36  ;;  %v1425_v30 = vmul.f32 %v2375_v5, %v1120_v10  ;;  %v1068_v24 = vmul.f32 %v2611_v40, %v1067_v56  ;;  %v1251_v16 = vadd.f32 %v2607_v27, %v1250_v47  ;;  %1888 = vmatmul.msk.f32.gmra.mxu3 %vm678_vm1, %v1430_v59  ;;  %vm2706_vm4 = vmor %vm1252_vm9, %vm1253_vm14 }
 0x284   :  { %v2667_v42 = vpop.eup %2011  ;;  %v1368_v9 = vand.u32 2147483647, %v2628_v44  ;;  %v1077_v32 = vor.u32 1.1754944e-38, %v1076_v51  ;;  %v1012_v5 = vmul.f32 %v2620_v15, %v1011_v6  ;;  %v1021_v58 = vor.u32 1.1754944e-38, %v1020_v31 }
 0x285   :  { %v2665_v57 = vpop.xlane.xlu1 %923  ;;  %v1304_v61 = vmul.f32 %v2667_v42, %v2618_v36  ;;  %1882 = vmatmul.msk.f32.gmra.mxu2 %vm678_vm1, %v1425_v30  ;;  %v2698_v60 = vor.u32 1.1754944e-38, %v1132_v48  ;;  %v1312_v34 = vand.u32 2147483647, %v2618_v36  ;;  %vm1364_vm3 = vweird.f32 %v2628_v44 }
 0x286   :  { %v2671_v13 = vpop.xlane.xlu2 %920  ;;  %v2673_v53 = vpop.eup %2013  ;;  %v2712_v45 = vor.u32 1.1754944e-38, %v1314_v8  ;;  %v1370_v0 = vand.u32 2147483648, %v2628_v44  ;;  %v1255_v20 = vsel %vm2706_vm4, %v2607_v27, %v1251_v16  ;;  %vm2720_vm5 = vcmp.eq.f32.partialorder %v1368_v9, 8.507059e+37 }
 0x287   :  { %2017 = vrcp.f32 %v2671_v13  ;;  %v2684_v62 = vpop.xlane.xlu0 %935  ;;  %v2686_v18 = vpop.eup %2015  ;;  %v1360_v17 = vmul.f32 %v2673_v53, %v2628_v44  ;;  %v1069_v47 = vadd.f32 %v2611_v40, %v1068_v24  ;;  %v1305_v55 = vsub.f32 1.0, %v1304_v61 }
 0x288   :  { %v1122_v52 = vmul.f32 %v2686_v18, %v2625_v49  ;;  %2019 = vrcp.f32 %v2684_v62  ;;  %vm1071_vm6 = vweird.f32 %v2611_v40  ;;  %v1074_v51 = vand.u32 2147483647, %v2577_v7 }
 0x289   :  { %v1361_v63 = vsub.f32 1.0, %v1360_v17  ;;  %2021 = vrcp.f32 %v2665_v57  ;;  %v1013_v6 = vadd.f32 %v2620_v15, %v1012_v5  ;;  %vm1309_vm7 = vweird.f32 %v2667_v42  ;;  %vm1072_vm9 = vmor %vm1070_vm12, %vm1071_vm6 }
 0x28a   :  { %vm1365_vm8 = vweird.f32 %v2673_v53  ;;  %v1123_v10 = vsub.f32 1.0, %v1122_v52  ;;  %vm1308_vm10 = vweird.f32 %v2618_v36  ;;  %v1073_v8 = vsel %vm1072_vm9, %v2611_v40, %v1069_v47 }
 0x28b   :  { %v1362_v56 = vmul.f32 %v2673_v53, %v1361_v63  ;;  %vm1075_vm11 = vcmp.eq.f32.partialorder %v1074_v51, 8.507059e+37  ;;  %vm1015_vm13 = vweird.f32 %v2620_v15  ;;  %v1260_v24 = vsel %vm2676_vm15, %v1259_v35, %v1255_v20  ;;  %vm2763_vm15 = vmor %vm1364_vm3, %vm1365_vm8 }
 0x28c   :  { %vm1126_vm14 = vweird.f32 %v2625_v49  ;;  %v1371_v16 = vor.u32 1.1754944e-38, %v1370_v0  ;;  %v1078_v17 = vsel %vm1075_vm11, %v1077_v32, %v1073_v8  ;;  %vm2752_vm12 = vmor %vm1014_vm2, %vm1015_vm13  ;;  %v1306_v5 = vmul.f32 %v2667_v42, %v1305_v55 }
 0x28d   :  { %v2726_v54 = vpop.eup %2017  ;;  %v2731_v27 = vpop.xlane.xlu1 %962  ;;  %v1363_v31 = vadd.f32 %v2673_v53, %v1362_v56  ;;  %v1422_v3 = vmul.f32 %v2389_v22, %v1078_v17  ;;  %v1017_v32 = vsel %vm2752_vm12, %v2620_v15, %v1013_v6  ;;  %v1018_v61 = vand.u32 2147483647, %v2592_v28  ;;  %vm2820_vm9 = vmor %vm1308_vm10, %vm1309_vm7 }
 0x28e   :  { %v1192_v48 = vmul.f32 %v2726_v54, %v2671_v13  ;;  %v2740_v59 = vpop.xlane.xlu2 %959  ;;  %v2756_v40 = vpop.eup %2019  ;;  %v1200_v52 = vand.u32 2147483647, %v2671_v13  ;;  %v1202_v0 = vand.u32 2147483648, %v2671_v13  ;;  %v1124_v22 = vmul.f32 %v2686_v18, %v1123_v10 }
 0x28f   :  { %v2745_v30 = vpop.xlane.xlu0 %947  ;;  %v2772_v63 = vpop.eup %2021  ;;  %v1367_v39 = vsel %vm2763_vm15, %v2673_v53, %v1363_v31  ;;  %vm2781_vm2 = vcmp.eq.f32.partialorder %v1312_v34, 8.507059e+37  ;;  %v1262_v28 = vmul.f32 %v2756_v40, %v2684_v62  ;;  %1878 = vmatmul.msk.f32.gmra.mxu1 %vm678_vm1, %v1422_v3  ;;  %vm1019_vm3 = vcmp.eq.f32.partialorder %v1018_v61, 8.507059e+37 }
 0x290   :  { %v1193_v7 = vsub.f32 1.0, %v1192_v48  ;;  %2023 = vrcp.f32 %v2740_v59  ;;  %vm1197_vm4 = vweird.f32 %v2726_v54  ;;  %v1022_v53 = vsel %vm1019_vm3, %v1021_v58, %v1017_v32 }
 0x291   :  { %2025 = vrcp.f32 %v2731_v27  ;;  %v1307_v34 = vadd.f32 %v2667_v42, %v1306_v5  ;;  %v1372_v56 = vsel %vm2720_vm5, %v1371_v16, %v1367_v39  ;;  %v1206_v47 = vmul.f32 %v2772_v63, %v2665_v57 }
 0x292   :  { %v1194_v44 = vmul.f32 %v2726_v54, %v1193_v7  ;;  %v1418_v55 = vmul.f32 %v2384_v4, %v1022_v53  ;;  %vm1196_vm6 = vweird.f32 %v2671_v13  ;;  %vm2799_vm8 = vcmp.eq.f32.partialorder %v1200_v52, 8.507059e+37 }
 0x293   :  { %v1216_v58 = vand.u32 2147483648, %v2665_v57  ;;  %2027 = vrcp.f32 %v2745_v30  ;;  %vm2809_vm5 = vmor %vm1196_vm6, %vm1197_vm4  ;;  %v1203_v48 = vor.u32 1.1754944e-38, %v1202_v0  ;;  %v1263_v4 = vsub.f32 1.0, %v1262_v28 }
 0x294   :  { %v1195_v15 = vadd.f32 %v2726_v54, %v1194_v44  ;;  %v1272_v13 = vand.u32 2147483648, %v2684_v62  ;;  %1873 = vmatmul.msk.f32.gmra.mxu0 %vm678_vm1, %v1418_v55  ;;  %v1125_v10 = vadd.f32 %v2686_v18, %v1124_v22  ;;  %vm1127_vm11 = vweird.f32 %v2686_v18 }
 0x295   :  { %v2807_v31 = vpop.xlane.xlu1 %953  ;;  %v1130_v7 = vand.u32 2147483647, %v2625_v49  ;;  %v1443_v17 = vmul.f32 %v2402_v26, %v1372_v56  ;;  %v1311_v36 = vsel %vm2820_vm9, %v2667_v42, %v1307_v34  ;;  %v1207_v35 = vsub.f32 1.0, %v1206_v47  ;;  %vm1128_vm7 = vmor %vm1126_vm14, %vm1127_vm11 }
 0x296   :  { %v2805_v6 = vpop.xlane.xlu2 %950  ;;  %v1199_v16 = vsel %vm2809_vm5, %v2726_v54, %v1195_v15  ;;  %v2832_v5 = vpop.eup %2023  ;;  %v1435_v54 = vmul.f32 %v2386_v2, %v1260_v24  ;;  %vm1266_vm10 = vweird.f32 %v2684_v62  ;;  %v1384_v26 = vand.u32 2147483648, %v2740_v59 }
 0x297   :  { %v2830_v9 = vpop.xlane.xlu0 %926  ;;  %2029 = vrcp.f32 %v2805_v6  ;;  %v2841_v3 = vpop.eup %2025  ;;  %v1129_v32 = vsel %vm1128_vm7, %v2686_v18, %v1125_v10  ;;  %vm1131_vm13 = vcmp.eq.f32.partialorder %v1130_v7, 8.507059e+37  ;;  %1905 = vmatmul.msk.f32.vlgmr.msrb.gmra.mxu3 %vm678_vm1, %v1443_v17  ;;  %v1204_v42 = vsel %vm2799_vm8, %v1203_v48, %v1199_v16 }
 0x298   :  { %v1264_v49 = vmul.f32 %v2756_v40, %v1263_v4  ;;  %v1134_v2 = vsel %vm1131_vm13, %v2698_v60, %v1129_v32  ;;  %1895 = vmatmul.msk.f32.vlgmr.msrb.gmra.mxu1 %vm678_vm1, %v1435_v54  ;;  %2031 = vrcp.f32 %v2807_v31  ;;  %v1316_v18 = vsel %vm2781_vm2, %v2712_v45, %v1311_v36 }
 0x299   :  { %v2853_v24 = vpop.eup %2027  ;;  %v2858_v61 = vor.u32 1.1754944e-38, %v1216_v58  ;;  %v1374_v39 = vmul.f32 %v2832_v5, %v2740_v59  ;;  %v1426_v44 = vmul.f32 %v2400_v25, %v1134_v2  ;;  %v1208_v52 = vmul.f32 %v2772_v63, %v1207_v35 }
 0x29a   :  { %v1273_v60 = vor.u32 1.1754944e-38, %v1272_v13  ;;  %v1388_v0 = vmul.f32 %v2841_v3, %v2731_v27  ;;  %2033 = vrcp.f32 %v2830_v9  ;;  %v2867_v22 = vor.u32 1.1754944e-38, %v1384_v26 }
 0x29b   :  { %v1398_v20 = vand.u32 2147483648, %v2731_v27  ;;  %v1318_v45 = vmul.f32 %v2853_v24, %v2745_v30  ;;  %1883 = vmatmul.msk.f32.gmra.mxu2 %vm678_vm1, %v1426_v44  ;;  %v1431_v28 = vmul.f32 %v2416_v46, %v1204_v42  ;;  %vm1210_vm14 = vweird.f32 %v2665_v57 }
 0x29c   :  { %v1328_v53 = vand.u32 2147483648, %v2745_v30  ;;  %v1342_v34 = vand.u32 2147483648, %v2805_v6  ;;  %v1265_v56 = vadd.f32 %v2756_v40, %v1264_v49  ;;  %vm1267_vm12 = vweird.f32 %v2756_v40 }
 0x29d   :  { %v2876_v15 = vpop.eup %2029  ;;  %v2883_v47 = vpop.xlane.xlu1 %941  ;;  %v1375_v55 = vsub.f32 1.0, %v1374_v39  ;;  %1890 = vmatmul.msk.f32.vlgmr.msrb.gmra.mxu0 %vm678_vm1, %v1431_v28  ;;  %vm2890_vm15 = vmor %vm1266_vm10, %vm1267_vm12  ;;  %v1270_v58 = vand.u32 2147483647, %v2684_v62  ;;  %v1389_v48 = vsub.f32 1.0, %v1388_v0  ;;  %v1356_v4 = vand.u32 2147483648, %v2807_v31 }
 0x29e   :  { %v2874_v25 = vpop.xlane.xlu2 %938  ;;  %v1332_v46 = vmul.f32 %v2876_v15, %v2805_v6  ;;  %v2896_v12 = vpop.eup %2031  ;;  %v1230_v13 = vand.u32 2147483648, %v2830_v9  ;;  %v1269_v10 = vsel %vm2890_vm15, %v2756_v40, %v1265_v56  ;;  %vm1378_vm2 = vweird.f32 %v2740_v59 }
 0x29f   :  { %2035 = vrcp.f32 %v2874_v25  ;;  %v1319_v8 = vsub.f32 1.0, %v1318_v45  ;;  %v1346_v16 = vmul.f32 %v2896_v12, %v2807_v31  ;;  %vm1271_vm3 = vcmp.eq.f32.partialorder %v1270_v58, 8.507059e+37  ;;  %v2907_v62 = vpop.xlane.xlu0 %965 }
 0x2a0   :  { %2037 = vrcp.f32 %v2883_v47  ;;  %v2909_v7 = vpop.eup %2033  ;;  %v2911_v17 = vor.u32 1.1754944e-38, %v1398_v20  ;;  %v2913_v36 = vor.u32 1.1754944e-38, %v1328_v53  ;;  %v1274_v35 = vsel %vm1271_vm3, %v1273_v60, %v1269_v10 }
 0x2a1   :  { %v1286_v40 = vand.u32 2147483648, %v2874_v25  ;;  %v1333_v54 = vsub.f32 1.0, %v1332_v46  ;;  %v1347_v26 = vsub.f32 1.0, %v1346_v16  ;;  %v1439_v32 = vmul.f32 %v2398_v11, %v1316_v18 }
 0x2a2   :  { %v1436_v42 = vmul.f32 %v2421_v50, %v1274_v35  ;;  %v1376_v49 = vmul.f32 %v2832_v5, %v1375_v55  ;;  %vm1322_vm4 = vweird.f32 %v2745_v30  ;;  %v2920_v2 = vor.u32 1.1754944e-38, %v1342_v34 }
 0x2a3   :  { %v1220_v39 = vmul.f32 %v2909_v7, %v2830_v9  ;;  %2039 = vrcp.f32 %v2907_v62  ;;  %v1390_v60 = vmul.f32 %v2841_v3, %v1389_v48  ;;  %v1320_v0 = vmul.f32 %v2853_v24, %v1319_v8  ;;  %1900 = vmatmul.msk.f32.vlgmr.msrb.gmra.mxu2 %vm678_vm1, %v1439_v32 }
 0x2a4   :  { %v2929_v11 = vor.u32 1.1754944e-38, %v1356_v4  ;;  %v2931_v50 = vor.u32 1.1754944e-38, %v1230_v13  ;;  %1896 = vmatmul.msk.f32.gmra.mxu1 %vm678_vm1, %v1436_v42  ;;  %v2937_v20 = vor.u32 1.1754944e-38, %v1286_v40  ;;  %v1209_v45 = vadd.f32 %v2772_v63, %v1208_v52 }
 0x2a5   :  { %v2925_v44 = vpop.eup %2035  ;;  %vm1211_vm6 = vweird.f32 %v2772_v63  ;;  %v2944_v53 = vmul.f32 %v2876_v15, %v1333_v54  ;;  %v2947_v34 = vmul.f32 %v2896_v12, %v1347_v26  ;;  %v1300_v56 = vand.u32 2147483648, %v2883_v47 }
 0x2a6   :  { %v1276_v18 = vmul.f32 %v2925_v44, %v2874_v25  ;;  %v2941_v28 = vpop.eup %2037  ;;  %vm2952_vm8 = vmor %vm1210_vm14, %vm1211_vm6  ;;  %v1214_v52 = vand.u32 2147483647, %v2665_v57  ;;  %vm1392_vm5 = vweird.f32 %v2731_v27  ;;  %v1221_v46 = vsub.f32 1.0, %v1220_v39  ;;  %v2979_v40 = vpop.xlane.xlu2 %929 }
 0x2a7   :  { %v1290_v51 = vmul.f32 %v2941_v28, %v2883_v47  ;;  %v1412_v58 = vand.u32 2147483648, %v2907_v62  ;;  %v1213_v48 = vsel %vm2952_vm8, %v2772_v63, %v1209_v45  ;;  %v1377_v4 = vadd.f32 %v2832_v5, %v1376_v49 }
 0x2a8   :  { %vm1215_vm9 = vcmp.eq.f32.partialorder %v1214_v52, 8.507059e+37  ;;  %vm1379_vm11 = vweird.f32 %v2832_v5  ;;  %v1382_v13 = vand.u32 2147483647, %v2740_v59  ;;  %vm1224_vm7 = vweird.f32 %v2830_v9 }
 0x2a9   :  { %v2967_v57 = vpop.eup %2039  ;;  %v1277_v10 = vsub.f32 1.0, %v1276_v18  ;;  %v1410_v8 = vand.u32 2147483647, %v2907_v62  ;;  %v1218_v16 = vsel %vm1215_vm9, %v2858_v61, %v1213_v48  ;;  %vm2974_vm10 = vmor %vm1378_vm2, %vm1379_vm11  ;;  %v1321_v35 = vadd.f32 %v2853_v24, %v1320_v0 }
 0x2aa   :  { %vm1336_vm13 = vweird.f32 %v2805_v6  ;;  %v1291_v54 = vsub.f32 1.0, %v1290_v51  ;;  %v1402_v26 = vmul.f32 %v2967_v57, %v2907_v62  ;;  %v1432_v32 = vmul.f32 %v2414_v41, %v1218_v16 }
 0x2ab   :  { %v1381_v59 = vsel %vm2974_vm10, %v2832_v5, %v1377_v4  ;;  %v1222_v61 = vmul.f32 %v2909_v7, %v1221_v46  ;;  %vm1383_vm14 = vcmp.eq.f32.partialorder %v1382_v13, 8.507059e+37  ;;  %vm1323_vm12 = vweird.f32 %v2853_v24 }
 0x2ac   :  { %v1326_v42 = vand.u32 2147483647, %v2745_v30  ;;  %v1403_v49 = vsub.f32 1.0, %v1402_v26  ;;  %v2991_v39 = vor.u32 1.1754944e-38, %v1412_v58  ;;  %1891 = vmatmul.msk.f32.gmra.mxu0 %vm678_vm1, %v1432_v32  ;;  %v1386_v0 = vsel %vm1383_vm14, %v2867_v22, %v1381_v59  ;;  %vm1324_vm15 = vmor %vm1322_vm4, %vm1323_vm12 }
 0x2ad   :  { %2041 = vrcp.f32 %v2979_v40  ;;  %v1278_v41 = vmul.f32 %v2925_v44, %v1277_v10  ;;  %vm1280_vm2 = vweird.f32 %v2874_v25  ;;  %v1444_v5 = vmul.f32 %v2431_v14, %v1386_v0 }
 0x2ae   :  { %v1325_v18 = vsel %vm1324_vm15, %v2853_v24, %v1321_v35  ;;  %vm1327_vm3 = vcmp.eq.f32.partialorder %v1326_v42, 8.507059e+37  ;;  %v1292_v45 = vmul.f32 %v2941_v28, %v1291_v54  ;;  %v1404_v55 = vmul.f32 %v2967_v57, %v1403_v49 }
 0x2af   :  { %vm1406_vm6 = vweird.f32 %v2907_v62  ;;  %vm1407_vm8 = vweird.f32 %v2967_v57  ;;  %v1330_v30 = vsel %vm1327_vm3, %v2913_v36, %v1325_v18  ;;  %vm1350_vm4 = vweird.f32 %v2807_v31  ;;  %1906 = vmatmul.msk.f32.gmra.mxu3 %vm678_vm1, %v1444_v5 }
 0x2b0   :  { %v1440_v22 = vmul.f32 %v2433_v43, %v1330_v30  ;;  %v1391_v14 = vadd.f32 %v2841_v3, %v1390_v60  ;;  %vm1393_vm9 = vweird.f32 %v2841_v3  ;;  %v1396_v24 = vand.u32 2147483647, %v2731_v27 }
 0x2b1   :  { %v1405_v52 = vadd.f32 %v2967_v57, %v1404_v55  ;;  %v1242_v46 = vand.u32 2147483647, %v2979_v40  ;;  %v1244_v51 = vand.u32 2147483648, %v2979_v40  ;;  %vm1394_vm11 = vmor %vm1392_vm5, %vm1393_vm9  ;;  %v1223_v36 = vadd.f32 %v2909_v7, %v1222_v61 }
 0x2b2   :  { %vm3019_vm10 = vcmp.eq.f32.partialorder %v1410_v8, 8.507059e+37  ;;  %1901 = vmatmul.msk.f32.gmra.mxu2 %vm678_vm1, %v1440_v22  ;;  %v1395_v43 = vsel %vm1394_vm11, %v2841_v3, %v1391_v14  ;;  %vm1397_vm14 = vcmp.eq.f32.partialorder %v1396_v24, 8.507059e+37  ;;  %vm1225_vm12 = vweird.f32 %v2909_v7 }
 0x2b3   :  { %v1228_v60 = vand.u32 2147483647, %v2830_v9  ;;  %v2042_v48 = vpop.eup %2041  ;;  %vm1294_vm15 = vweird.f32 %v2883_v47  ;;  %v1400_v27 = vsel %vm1397_vm14, %v2911_v17, %v1395_v43  ;;  %vm1226_vm5 = vmor %vm1224_vm7, %vm1225_vm12  ;;  %v1335_v4 = vadd.f32 %v2876_v15, %v2944_v53 }
 0x2b4   :  { %vm1337_vm3 = vweird.f32 %v2876_v15  ;;  %v1340_v3 = vand.u32 2147483647, %v2805_v6  ;;  %v1234_v13 = vmul.f32 %v2042_v48, %v2979_v40  ;;  %vm1239_vm9 = vweird.f32 %v2042_v48 }
 0x2b5   :  { %v1445_v10 = vmul.f32 %v2428_v21, %v1400_v27  ;;  %v1227_v8 = vsel %vm1226_vm5, %v2909_v7, %v1223_v36  ;;  %vm1338_vm11 = vmor %vm1336_vm13, %vm1337_vm3  ;;  %vm1229_vm14 = vcmp.eq.f32.partialorder %v1228_v60, 8.507059e+37  ;;  %v1279_v17 = vadd.f32 %v2925_v44, %v1278_v41 }
 0x2b6   :  { %v1339_v9 = vsel %vm1338_vm11, %v2876_v15, %v1335_v4  ;;  %vm1341_vm7 = vcmp.eq.f32.partialorder %v1340_v3, 8.507059e+37  ;;  %v1235_v53 = vsub.f32 1.0, %v1234_v13  ;;  %v1232_v16 = vsel %vm1229_vm14, %v2931_v50, %v1227_v8  ;;  %vm3060_vm5 = vmor %vm1406_vm6, %vm1407_vm8 }
 0x2b7   :  { %v1344_v63 = vsel %vm1341_vm7, %v2920_v2, %v1339_v9  ;;  %vm1281_vm12 = vweird.f32 %v2925_v44  ;;  %v1433_v21 = vmul.f32 %v2447_v29, %v1232_v16  ;;  %v1284_v15 = vand.u32 2147483647, %v2874_v25  ;;  %1907 = vmatmul.msk.f32.gmra.mxu3 %vm678_vm1, %v1445_v10 }
 0x2b8   :  { %v1441_v7 = vmul.f32 %v2445_v23, %v1344_v63  ;;  %vm3049_vm13 = vmor %vm1280_vm2, %vm1281_vm12  ;;  %v1349_v35 = vadd.f32 %v2896_v12, %v2947_v34  ;;  %v1479_v50 = vpop.f32.mrf.mxu0  ;;  %v1236_v23 = vmul.f32 %v2042_v48, %v1235_v53  ;;  %vm1351_vm2 = vweird.f32 %v2896_v12 }
 0x2b9   :  { %v1283_v2 = vsel %vm3049_vm13, %v2925_v44, %v1279_v17  ;;  %v1354_v25 = vand.u32 2147483647, %v2807_v31  ;;  %1799 = vst.msk [vmem:[%s3242_s3] sm:$0xff] %vm125_vm0, %v1479_v50  ;;  %v1293_v62 = vadd.f32 %v2941_v28, %v1292_v45  ;;  %vm1295_vm6 = vweird.f32 %v2941_v28  ;;  %1892 = vmatmul.msk.f32.gmra.mxu0 %vm678_vm1, %v1433_v21  ;;  %vm3079_vm3 = vmor %vm1350_vm4, %vm1351_vm2 }
 0x2ba   :  { %vm1285_vm8 = vcmp.eq.f32.partialorder %v1284_v15, 8.507059e+37  ;;  %v1409_v34 = vsel %vm3060_vm5, %v2967_v57, %v1405_v52  ;;  %v1237_v54 = vadd.f32 %v2042_v48, %v1236_v23  ;;  %vm1238_vm11 = vweird.f32 %v2979_v40  ;;  %1902 = vmatmul.msk.f32.gmra.mxu2 %vm678_vm1, %v1441_v7  ;;  %vm1296_vm14 = vmor %vm1294_vm15, %vm1295_vm6 }
 0x2bb   :  { %v1288_v26 = vsel %vm1285_vm8, %v2937_v20, %v1283_v2  ;;  %v1353_v32 = vsel %vm3079_vm3, %v2896_v12, %v1349_v35  ;;  %v1298_v31 = vand.u32 2147483647, %v2883_v47  ;;  %vm1240_vm4 = vmor %vm1238_vm11, %vm1239_vm9  ;;  %v1245_v59 = vor.u32 1.1754944e-38, %v1244_v51 }
 0x2bc   :  { %v1437_v61 = vmul.f32 %v2459_v37, %v1288_v26  ;;  %v1414_v57 = vsel %vm3019_vm10, %v2991_v39, %v1409_v34  ;;  %vm1243_vm7 = vcmp.eq.f32.partialorder %v1242_v46, 8.507059e+37  ;;  %vm1355_vm12 = vcmp.eq.f32.partialorder %v1354_v25, 8.507059e+37 }
 0x2bd   :  { %v1446_v12 = vmul.f32 %v2461_v38, %v1414_v57  ;;  %v1241_v20 = vsel %vm1240_vm4, %v2042_v48, %v1237_v54  ;;  %v1358_v40 = vsel %vm1355_vm12, %v2929_v11, %v1353_v32  ;;  %v1297_v37 = vsel %vm1296_vm14, %v2941_v28, %v1293_v62 }
 0x2be   :  { %1897 = vmatmul.msk.f32.gmra.mxu1 %vm678_vm1, %v1437_v61  ;;  %v1246_v42 = vsel %vm1243_vm7, %v1245_v59, %v1241_v20  ;;  %v1301_v49 = vor.u32 1.1754944e-38, %v1300_v56  ;;  %vm1299_vm10 = vcmp.eq.f32.partialorder %v1298_v31, 8.507059e+37  ;;  %v1442_v0 = vmul.f32 %v2449_v33, %v1358_v40 }
 0x2bf   :  { %v1434_v39 = vmul.f32 %v2471_v1, %v1246_v42  ;;  %1908 = vmatmul.msk.f32.gmra.mxu3 %vm678_vm1, %v1446_v12 }
 0x2c0   :  { %v1302_v41 = vsel %vm1299_vm10, %v1301_v49, %v1297_v37 }
 0x2c1   :  { %1893 = vmatmul.msk.f32.gmra.mxu0 %vm678_vm1, %v1434_v39  ;;  %v1438_v38 = vmul.f32 %v2463_v19, %v1302_v41 }
 0x2c2   :  { %1903 = vmatmul.msk.f32.gmra.mxu2 %vm678_vm1, %v1442_v0 }
 0x2c6   :  { %1898 = vmatmul.msk.f32.gmra.mxu1 %vm678_vm1, %v1438_v38  ;;  %v1567_v11 = vpop.f32.mrf.mxu2 }
 0x2c7   :  { %1807 = vst.msk [vmem:[%s3242_s3 + $0x40] sm:$0xff] %vm125_vm0, %v1567_v11 }
 0x2d8   :  { %v1523_v1 = vpop.f32.mrf.mxu1 }
 0x2d9   :  { %1803 = vst.msk [vmem:[%s3242_s3 + $0x20] sm:$0xff] %vm125_vm0, %v1523_v1 }
 0x2e0   :  { %v1482_v33 = vpop.f32.mrf.mxu0 }
 0x2e1   :  { %1800 = vst.msk [vmem:[%s3242_s3 + $0x8] sm:$0xff] %vm125_vm0, %v1482_v33 }
 0x2e7   :  { %v1611_v19 = vpop.f32.mrf.mxu3 }
 0x2e8   :  { %1811 = vst.msk [vmem:[%s3242_s3 + $0x60] sm:$0xff] %vm125_vm0, %v1611_v19 }
 0x2ee   :  { %v1526_v47 = vpop.f32.mrf.mxu1  ;;  %v1570_v28 = vpop.f32.mrf.mxu2 }
 0x2ef   :  { %1804 = vst.msk [vmem:[%s3242_s3 + $0x28] sm:$0xff] %vm125_vm0, %v1526_v47  ;;  %v1614_v56 = vpop.f32.mrf.mxu3 }
 0x2f0   :  { %1808 = vst.msk [vmem:[%s3242_s3 + $0x48] sm:$0xff] %vm125_vm0, %v1570_v28 }
 0x2f1   :  { %1812 = vst.msk [vmem:[%s3242_s3 + $0x68] sm:$0xff] %vm125_vm0, %v1614_v56 }
 0x2f7   :  { %v1485_v5 = vpop.f32.mrf.mxu0 }
 0x2f8   :  { %1801 = vst.msk [vmem:[%s3242_s3 + $0x10] sm:$0xff] %vm125_vm0, %v1485_v5  ;;  %v1529_v18 = vpop.f32.mrf.mxu1 }
 0x2f9   :  { %1805 = vst.msk [vmem:[%s3242_s3 + $0x30] sm:$0xff] %vm125_vm0, %v1529_v18 }
 0x2fe   :  { %v1617_v45 = vpop.f32.mrf.mxu3 }
 0x2ff   :  { %1813 = vst.msk [vmem:[%s3242_s3 + $0x70] sm:$0xff] %vm125_vm0, %v1617_v45 }
 0x306   :  { %v1620_v55 = vpop.f32.mrf.mxu3 }
 0x307   :  { %1814 = vst.msk [vmem:[%s3242_s3 + $0x78] sm:$0xff] %vm125_vm0, %v1620_v55 }
 0x308   :  { %v1573_v30 = vpop.f32.mrf.mxu2 }
 0x309   :  { %1809 = vst.msk [vmem:[%s3242_s3 + $0x50] sm:$0xff] %vm125_vm0, %v1573_v30 }
 0x30c   :  { %v1532_v22 = vpop.f32.mrf.mxu1 }
 0x30d   :  { %1806 = vst.msk [vmem:[%s3242_s3 + $0x38] sm:$0xff] %vm125_vm0, %v1532_v22 }
 0x311   :  { %v1488_v14 = vpop.f32.mrf.mxu0 }
 0x312   :  { %1802 = vst.msk [vmem:[%s3242_s3 + $0x18] sm:$0xff] %vm125_vm0, %v1488_v14 }
 0x315   :  { %v1699_v24 = vpop.f32.mrf.mxu1 }
 0x316   :  { %1819 = vst.msk [vmem:[%s3242_s3 + $0xa0] sm:$0xff] %vm125_vm0, %v1699_v24 }
 0x31a   :  { %v1655_v52 = vpop.f32.mrf.mxu0  ;;  %v1787_v46 = vpop.f32.mrf.mxu3 }
 0x31b   :  { %1815 = vst.msk [vmem:[%s3242_s3 + $0x80] sm:$0xff] %vm125_vm0, %v1655_v52 }
 0x31c   :  { %1827 = vst.msk [vmem:[%s3242_s3 + $0xe0] sm:$0xff] %vm125_vm0, %v1787_v46 }
 0x31e   :  { %v1576_v51 = vpop.f32.mrf.mxu2 }
 0x31f   :  { %1810 = vst.msk [vmem:[%s3242_s3 + $0x58] sm:$0xff] %vm125_vm0, %v1576_v51 }
 0x321   :  { %v1702_v36 = vpop.f32.mrf.mxu1 }
 0x322   :  { %1820 = vst.msk [vmem:[%s3242_s3 + $0xa8] sm:$0xff] %vm125_vm0, %v1702_v36 }
 0x326   :  { %v1743_v58 = vpop.f32.mrf.mxu2 }
 0x327   :  { %1823 = vst.msk [vmem:[%s3242_s3 + $0xc0] sm:$0xff] %vm125_vm0, %v1743_v58 }
 0x329   :  { %v1658_v43 = vpop.f32.mrf.mxu0 }
 0x32a   :  { %1816 = vst.msk [vmem:[%s3242_s3 + $0x88] sm:$0xff] %vm125_vm0, %v1658_v43 }
 0x332   :  { %v1790_v60 = vpop.f32.mrf.mxu3 }
 0x333   :  { %1828 = vst.msk [vmem:[%s3242_s3 + $0xe8] sm:$0xff] %vm125_vm0, %v1790_v60 }
 0x335   :  { %v1746_v48 = vpop.f32.mrf.mxu2 }
 0x336   :  { %1824 = vst.msk [vmem:[%s3242_s3 + $0xc8] sm:$0xff] %vm125_vm0, %v1746_v48  ;;  %v1661_v27 = vpop.f32.mrf.mxu0 }
 0x337   :  { %1817 = vst.msk [vmem:[%s3242_s3 + $0x90] sm:$0xff] %vm125_vm0, %v1661_v27 }
 0x33a   :  { %v1793_v3 = vpop.f32.mrf.mxu3 }
 0x33b   :  { %v1705_v4 = vpop.f32.mrf.mxu1  ;;  %1829 = vst.msk [vmem:[%s3242_s3 + $0xf0] sm:$0xff] %vm125_vm0, %v1793_v3 }
 0x33c   :  { %1821 = vst.msk [vmem:[%s3242_s3 + $0xb0] sm:$0xff] %vm125_vm0, %v1705_v4 }
 0x33d   :  { %v1749_v13 = vpop.f32.mrf.mxu2 }
 0x33e   :  { %1825 = vst.msk [vmem:[%s3242_s3 + $0xd0] sm:$0xff] %vm125_vm0, %v1749_v13  ;;  %v1664_v10 = vpop.f32.mrf.mxu0 }
 0x33f   :  { %1818 = vst.msk [vmem:[%s3242_s3 + $0x98] sm:$0xff] %vm125_vm0, %v1664_v10 }
 0x342   :  { %v1796_v9 = vpop.f32.mrf.mxu3 }
 0x343   :  { %v1708_v8 = vpop.f32.mrf.mxu1  ;;  %1830 = vst.msk [vmem:[%s3242_s3 + $0xf8] sm:$0xff] %vm125_vm0, %v1796_v9 }
 0x344   :  { %1822 = vst.msk [vmem:[%s3242_s3 + $0xb8] sm:$0xff] %vm125_vm0, %v1708_v8 }
 0x345   :  { %v1752_v17 = vpop.f32.mrf.mxu2 }
 0x346   :  { %1826 = vst.msk [vmem:[%s3242_s3 + $0xd8] sm:$0xff] %vm125_vm0, %v1752_v17 }
 0x347   :  { %1835 = vsyncpa [#allocation3], 1 }
 0x348   :  { %1836 = vsyncpa [#allocation5], 1 }

</bundles_post_ra>
